<compile_context>
chip_gen: v5e
topology: v5e:2x2
jax: 0.10.0
libtpu: 0.0.40
codegen_flags: <defaults>
</compile_context>

<pallas_src>
import jax
import jax.numpy as jnp
from jax.experimental import pallas as pl
from jax.experimental.pallas import tpu as pltpu


def se_scale_kernel(w_ref, v_ref, b_ref, x_ref, o_ref):
    # 1x1 conv over this channel tile as VPU mul + XLU reduce:
    #   (tc, C_in) * (1, C_in) --sum over C_in--> (tc, 1)
    logits = jnp.sum(w_ref[...] * v_ref[...], axis=1, keepdims=True) + b_ref[...]
    # sigmoid (EUP exp + reciprocal); large-negative logits give exp->inf -> 0.0, which is correct
    scale = 1.0 / (1.0 + jnp.exp(-logits))                  # (tc, 1)
    # broadcast-multiply over the spatial (lane) axis
    o_ref[...] = (x_ref[...] * scale).astype(o_ref.dtype)


def se_scale(x248, x251, w, b, *, tc=432):
    """x248: (1, C_out, H, W), x251: (1, C_in, 1, 1), w: (C_out, C_in, 1, 1), b: (C_out,)"""
    n, c_out, h, wd = x248.shape
    assert n == 1, "kernel written for batch 1 (as in the reference module)"
    c_in = x251.shape[1]
    hw = h * wd

    x2d = x248.reshape(c_out, hw)          # (864, 196)
    v2d = x251.reshape(1, c_in)            # (1, 36)   lane-friendly row
    w2d = w.reshape(c_out, c_in)           # (864, 36)
    b2d = b.reshape(c_out, 1)              # (864, 1)

    assert c_out % tc == 0 and tc % 8 == 0

    out = pl.pallas_call(
        se_scale_kernel,
        out_shape=jax.ShapeDtypeStruct((c_out, hw), x248.dtype),
        grid_spec=pltpu.PrefetchScalarGridSpec(
            num_scalar_prefetch=0,
            grid=(c_out // tc,),                              # 864/432 = 2 steps
            in_specs=[
                pl.BlockSpec((tc, c_in), lambda i: (i, 0)),   # w tile
                pl.BlockSpec((1, c_in), lambda i: (0, 0)),    # v (full, reused)
                pl.BlockSpec((tc, 1), lambda i: (i, 0)),      # bias tile
                pl.BlockSpec((tc, hw), lambda i: (i, 0)),     # x tile
            ],
            out_specs=pl.BlockSpec((tc, hw), lambda i: (i, 0)),
        ),
        compiler_params=pltpu.CompilerParams(
            dimension_semantics=("parallel",)),
    )(w2d, v2d, b2d, x2d)

    return out.reshape(1, c_out, h, wd)


if __name__ == "__main__":
    key = jax.random.PRNGKey(0)
    k1, k2, k3, k4 = jax.random.split(key, 4)

    C_IN, C_OUT, H, W = 36, 864, 14, 14

    # deterministic synthetic parameters (Conv2d(36, 864, kernel_size=1) shapes)
    conv_w = jax.random.normal(k1, (C_OUT, C_IN, 1, 1), dtype=jnp.float32) * 0.05
    conv_b = jax.random.normal(k2, (C_OUT,), dtype=jnp.float32) * 0.05

    # deterministic example inputs matching the module's forward signature
    x251 = jax.random.normal(k3, (1, C_IN, 1, 1), dtype=jnp.float32)
    x248 = jax.random.normal(k4, (1, C_OUT, H, W), dtype=jnp.float32)

    y = se_scale(x248, x251, conv_w, conv_b)
    jax.block_until_ready(y)

    # lightweight sanity check against plain-JAX reference
    ref_s = jax.nn.sigmoid(
        jnp.einsum("oi,i->o", conv_w.reshape(C_OUT, C_IN), x251.reshape(C_IN)) + conv_b
    ).reshape(1, C_OUT, 1, 1)
    ref = ref_s * x248
    assert jnp.allclose(y, ref, atol=1e-5, rtol=1e-5), "mismatch vs reference"

    print("KERNEL_OK")
</pallas_src>

<mosaic_0001>
module attributes {stable_mosaic.version = 11 : i64} {
  func.func @se_scale_kernel(%arg0: i32, %arg1: memref<432x36xf32, #tpu.memory_space<vmem>>, %arg2: memref<1x36xf32, #tpu.memory_space<vmem>>, %arg3: memref<432x1xf32, #tpu.memory_space<vmem>>, %arg4: memref<432x196xf32, #tpu.memory_space<vmem>>, %arg5: memref<432x196xf32, #tpu.memory_space<vmem>>) attributes {dimension_semantics = [#tpu.dimension_semantics<parallel>], iteration_bounds = array<i64: 2>, scalar_prefetch = 0 : i64, scratch_operands = 0 : i64, tpu.core_type = #tpu.core_type<tc>, window_params = [{transform_indices = @transform_0, window_bounds = array<i64: 432, 36>}, {pipeline_mode = #tpu.pipeline_mode<synchronous>, transform_indices = @transform_1, window_bounds = array<i64: 1, 36>}, {transform_indices = @transform_2, window_bounds = array<i64: 432, 1>}, {transform_indices = @transform_3, window_bounds = array<i64: 432, 196>}, {transform_indices = @transform_4, window_bounds = array<i64: 432, 196>}]} {
    %c0 = arith.constant 0 : index
    %c0_0 = arith.constant 0 : index
    %0 = vector.load %arg1[%c0, %c0_0] : memref<432x36xf32, #tpu.memory_space<vmem>>, vector<432x36xf32>
    %c0_1 = arith.constant 0 : index
    %c0_2 = arith.constant 0 : index
    %1 = vector.load %arg2[%c0_1, %c0_2] : memref<1x36xf32, #tpu.memory_space<vmem>>, vector<1x36xf32>
    %2 = vector.broadcast %1 : vector<1x36xf32> to vector<432x36xf32>
    %3 = arith.mulf %0, %2 : vector<432x36xf32>
    %cst = arith.constant dense<0.000000e+00> : vector<432xf32>
    %4 = vector.multi_reduction <add>, %3, %cst [1] : vector<432x36xf32> to vector<432xf32>
    %5 = vector.shape_cast %4 : vector<432xf32> to vector<432x1xf32>
    %c0_3 = arith.constant 0 : index
    %c0_4 = arith.constant 0 : index
    %6 = vector.load %arg3[%c0_3, %c0_4] : memref<432x1xf32, #tpu.memory_space<vmem>>, vector<432x1xf32>
    %7 = arith.addf %5, %6 : vector<432x1xf32>
    %cst_5 = arith.constant 0.000000e+00 : f32
    %8 = vector.broadcast %cst_5 : f32 to vector<432x1xf32>
    %9 = arith.subf %8, %7 : vector<432x1xf32>
    %10 = math.exp %9 : vector<432x1xf32>
    %cst_6 = arith.constant 1.000000e+00 : f32
    %11 = vector.broadcast %cst_6 : f32 to vector<432x1xf32>
    %12 = arith.addf %11, %10 : vector<432x1xf32>
    %cst_7 = arith.constant 1.000000e+00 : f32
    %13 = vector.broadcast %cst_7 : f32 to vector<432x1xf32>
    %14 = arith.divf %13, %12 : vector<432x1xf32>
    %c0_8 = arith.constant 0 : index
    %c0_9 = arith.constant 0 : index
    %15 = vector.load %arg4[%c0_8, %c0_9] : memref<432x196xf32, #tpu.memory_space<vmem>>, vector<432x196xf32>
    %16 = vector.broadcast %14 : vector<432x1xf32> to vector<432x196xf32>
    %17 = arith.mulf %15, %16 : vector<432x196xf32>
    %c0_10 = arith.constant 0 : index
    %c0_11 = arith.constant 0 : index
    %18 = vector.load %arg5[%c0_10, %c0_11] : memref<432x196xf32, #tpu.memory_space<vmem>>, vector<432x196xf32>
    tpu.vector_store %arg5[%c0_10, %c0_11], %17 {strides = array<i32>} : memref<432x196xf32, #tpu.memory_space<vmem>>, vector<432x196xf32>,
    return
  }
  func.func @transform_0(%arg0: i32) -> (i32, i32) {
    %c0_i32 = arith.constant 0 : i32
    %c0_i32_0 = arith.constant 0 : i32
    return %arg0, %c0_i32 : i32, i32
  }
  func.func @transform_1(%arg0: i32) -> (i32, i32) {
    %c0_i32 = arith.constant 0 : i32
    %c0_i32_0 = arith.constant 0 : i32
    %c0_i32_1 = arith.constant 0 : i32
    return %c0_i32, %c0_i32_0 : i32, i32
  }
  func.func @transform_2(%arg0: i32) -> (i32, i32) {
    %c0_i32 = arith.constant 0 : i32
    %c0_i32_0 = arith.constant 0 : i32
    return %arg0, %c0_i32 : i32, i32
  }
  func.func @transform_3(%arg0: i32) -> (i32, i32) {
    %c0_i32 = arith.constant 0 : i32
    %c0_i32_0 = arith.constant 0 : i32
    return %arg0, %c0_i32 : i32, i32
  }
  func.func @transform_4(%arg0: i32) -> (i32, i32) {
    %c0_i32 = arith.constant 0 : i32
    %c0_i32_0 = arith.constant 0 : i32
    return %arg0, %c0_i32 : i32, i32
  }
}

</mosaic_0001>

<bundles_post_ra>
// kernel: tpu_custom_call.1
= control target key start
LH: loop header
LB: loop body
LE: loop exit
PB: predicated region body
PF: predicated region fallthrough
CT: control target
= control target key end

     0   :  { %s2614_s15 = smov 0   ;;  %s4674_s0 = inlined_call_operand.vmem [shape: f32[864,36], index: 0, kind: input, shape index: {}]   ;;  %s4675_s1 = inlined_call_operand.vmem [shape: f32[1,36], index: 1, kind: input, shape index: {}]   ;;  %s4676_s2 = inlined_call_operand.vmem [shape: f32[864,1], index: 2, kind: input, shape index: {}]   ;;  %s4677_s3 = inlined_call_operand.vmem [shape: f32[864,196], index: 3, kind: input, shape index: {}]   ;;  %s4678_s4 = inlined_call_operand.vmem [shape: f32[864,196], index: 4, kind: output, shape index: {}]  }
   0x1 LB: > { %s2336_s16 = sadd.s32 4294967295, %s2586_s15   ;;  %p2340_p0 = scmp.ge.s32.totalorder %s2586_s15, 1  ;;  %s2586_s15 = sphi %s2614_s15, %s14_s15  }
   0x2   : > { %p186_p1 = scmp.lt.s32.totalorder %s2586_s15, 3 }
   0x4   : > { %p187_p2 = pnand %p2340_p0, %p186_p1 }
   0x5   : > { %s224_s17 = smul.u32 (!%p187_p2), 54, %s2336_s16 }
   0x6   : > { %190 = sbr.rel (%p187_p2) target bundleno = 514 (0x202), region = 36 }
   0x7   : > { %p225_p3 = scmp.lt.s32.totalorder (!%p187_p2), %s224_s17, 107 }
   0xb   : > { %s4830_s17 = smov (!%p225_p3, %s224_s17), 107  ;;  %v2627_v0 = vld [vmem:[%s4675_s1] ss:$0 sm:$0xff]  ;;  %vm362_vm0 = vcmask 293888  }
   0xc   : > { %s2341_s20 = sshll.u32 %s4830_s17, 3  ;;  %s2349_s27 = sshll.u32 %s4830_s17, 4 }
   0xd   : > { %s2635_s23 = scalar_lea.vmem %s4674_s0, %s2341_s20  ;;  %s2777_s26 = scalar_lea.vmem %s4676_s2, %s2341_s20 }
   0xe   : > { %v254_v1 = vld [vmem:[%s2635_s23 + $0x20] sm:$0xff]  ;;  %v252_v2 = vld [vmem:[%s2635_s23 + $0x10] sm:$0xff]  ;;  %v255_v7 = vld [vmem:[%s2635_s23 + $0x28] sm:$0xff]  ;;  %s3943_s30 = scalar_lea.vmem %s4677_s3, %s2349_s27  ;;  %s3982_s7 = scalar_lea.vmem %s4678_s4, %s2349_s27 }
   0xf   : > { %v250_v3 = vld [vmem:[%s2635_s23] sm:$0xff]  ;;  %v312_v4 = vmul.f32 %v2627_v0, %v254_v1  ;;  %v310_v5 = vmul.f32 %v2627_v0, %v252_v2  ;;  %v253_v8 = vld [vmem:[%s2635_s23 + $0x18] sm:$0xff]  ;;  %v251_v12 = vld [vmem:[%s2635_s23 + $0x8] sm:$0xff]  ;;  %v313_v13 = vmul.f32 %v2627_v0, %v255_v7 }
  0x10   : > { %v308_v6 = vmul.f32 %v2627_v0, %v250_v3  ;;  %v311_v14 = vmul.f32 %v2627_v0, %v253_v8  ;;  %v309_v15 = vmul.f32 %v2627_v0, %v251_v12  ;;  %v258_v19 = vld [vmem:[%s2635_s23 + $0x40] sm:$0xff]  ;;  %v257_v20 = vld [vmem:[%s2635_s23 + $0x38] sm:$0xff]  ;;  %v256_v21 = vld [vmem:[%s2635_s23 + $0x30] sm:$0xff] }
  0x11   : > { %v375_v9 = vsel %vm362_vm0, %v312_v4, 0.0  ;;  %v369_v10 = vsel %vm362_vm0, %v310_v5, 0.0  ;;  %v378_v16 = vsel %vm362_vm0, %v313_v13, 0.0  ;;  %v316_v22 = vmul.f32 %v2627_v0, %v258_v19  ;;  %v261_v28 = vld [vmem:[%s2635_s23 + $0x58] sm:$0xff]  ;;  %v260_v29 = vld [vmem:[%s2635_s23 + $0x50] sm:$0xff]  ;;  %v259_v30 = vld [vmem:[%s2635_s23 + $0x48] sm:$0xff] }
  0x12   : > { %v363_v11 = vsel %vm362_vm0, %v308_v6, 0.0  ;;  %376 = vadd.xlane.f32.xlu2 %v375_v9  ;;  %370 = vadd.xlane.f32.xlu1 %v369_v10  ;;  %v372_v17 = vsel %vm362_vm0, %v311_v14, 0.0  ;;  %v366_v18 = vsel %vm362_vm0, %v309_v15, 0.0  ;;  %v315_v23 = vmul.f32 %v2627_v0, %v257_v20  ;;  %v264_v37 = vld [vmem:[%s2635_s23 + $0x70] sm:$0xff]  ;;  %v263_v38 = vld [vmem:[%s2635_s23 + $0x68] sm:$0xff]  ;;  %v262_v39 = vld [vmem:[%s2635_s23 + $0x60] sm:$0xff] }
  0x13   : > { %364 = vadd.xlane.f32.xlu0 %v363_v11  ;;  %v314_v24 = vmul.f32 %v2627_v0, %v256_v21  ;;  %v387_v25 = vsel %vm362_vm0, %v316_v22, 0.0  ;;  %v319_v31 = vmul.f32 %v2627_v0, %v261_v28  ;;  %v318_v32 = vmul.f32 %v2627_v0, %v260_v29  ;;  %v267_v46 = vld [vmem:[%s2635_s23 + $0x88] sm:$0xff]  ;;  %v266_v47 = vld [vmem:[%s2635_s23 + $0x80] sm:$0xff]  ;;  %v265_v48 = vld [vmem:[%s2635_s23 + $0x78] sm:$0xff] }
  0x14   : > { %v384_v26 = vsel %vm362_vm0, %v315_v23, 0.0  ;;  %v317_v33 = vmul.f32 %v2627_v0, %v259_v30  ;;  %v322_v40 = vmul.f32 %v2627_v0, %v264_v37  ;;  %v321_v41 = vmul.f32 %v2627_v0, %v263_v38  ;;  %v270_v55 = vld [vmem:[%s2635_s23 + $0xa0] sm:$0xff]  ;;  %v269_v56 = vld [vmem:[%s2635_s23 + $0x98] sm:$0xff]  ;;  %v268_v57 = vld [vmem:[%s2635_s23 + $0x90] sm:$0xff] }
  0x15   : > { %v381_v27 = vsel %vm362_vm0, %v314_v24, 0.0  ;;  %v396_v34 = vsel %vm362_vm0, %v319_v31, 0.0  ;;  %v393_v35 = vsel %vm362_vm0, %v318_v32, 0.0  ;;  %v320_v42 = vmul.f32 %v2627_v0, %v262_v39  ;;  %v273_v1 = vld [vmem:[%s2635_s23 + $0xb8] sm:$0xff]  ;;  %v272_v2 = vld [vmem:[%s2635_s23 + $0xb0] sm:$0xff]  ;;  %v271_v3 = vld [vmem:[%s2635_s23 + $0xa8] sm:$0xff] }
  0x16   : > { %v390_v36 = vsel %vm362_vm0, %v317_v33, 0.0  ;;  %v405_v43 = vsel %vm362_vm0, %v322_v40, 0.0  ;;  %v402_v44 = vsel %vm362_vm0, %v321_v41, 0.0  ;;  %v325_v49 = vmul.f32 %v2627_v0, %v267_v46  ;;  %v276_v10 = vld [vmem:[%s2635_s23 + $0xd0] sm:$0xff]  ;;  %v275_v11 = vld [vmem:[%s2635_s23 + $0xc8] sm:$0xff]  ;;  %v274_v12 = vld [vmem:[%s2635_s23 + $0xc0] sm:$0xff] }
  0x17   : > { %v399_v45 = vsel %vm362_vm0, %v320_v42, 0.0  ;;  %v324_v50 = vmul.f32 %v2627_v0, %v266_v47  ;;  %v323_v51 = vmul.f32 %v2627_v0, %v265_v48  ;;  %v328_v58 = vmul.f32 %v2627_v0, %v270_v55  ;;  %v279_v19 = vld [vmem:[%s2635_s23 + $0xe8] sm:$0xff]  ;;  %v278_v20 = vld [vmem:[%s2635_s23 + $0xe0] sm:$0xff]  ;;  %v277_v21 = vld [vmem:[%s2635_s23 + $0xd8] sm:$0xff] }
  0x18   : > { %v414_v52 = vsel %vm362_vm0, %v325_v49, 0.0  ;;  %v327_v59 = vmul.f32 %v2627_v0, %v269_v56  ;;  %v326_v60 = vmul.f32 %v2627_v0, %v268_v57  ;;  %v331_v4 = vmul.f32 %v2627_v0, %v273_v1  ;;  %v282_v28 = vld [vmem:[%s2635_s23 + $0x100] sm:$0xff]  ;;  %v281_v29 = vld [vmem:[%s2635_s23 + $0xf8] sm:$0xff]  ;;  %v280_v30 = vld [vmem:[%s2635_s23 + $0xf0] sm:$0xff] }
  0x19   : > { %v411_v53 = vsel %vm362_vm0, %v324_v50, 0.0  ;;  %v408_v54 = vsel %vm362_vm0, %v323_v51, 0.0  ;;  %v423_v61 = vsel %vm362_vm0, %v328_v58, 0.0  ;;  %v330_v5 = vmul.f32 %v2627_v0, %v272_v2  ;;  %v285_v37 = vld [vmem:[%s2635_s23 + $0x118] sm:$0xff]  ;;  %v284_v38 = vld [vmem:[%s2635_s23 + $0x110] sm:$0xff]  ;;  %v283_v39 = vld [vmem:[%s2635_s23 + $0x108] sm:$0xff] }
  0x1a   : > { %379 = vadd.xlane.f32.xlu2 %v378_v16  ;;  %373 = vadd.xlane.f32.xlu1 %v372_v17  ;;  %v420_v62 = vsel %vm362_vm0, %v327_v59, 0.0  ;;  %v417_v63 = vsel %vm362_vm0, %v326_v60, 0.0  ;;  %v329_v6 = vmul.f32 %v2627_v0, %v271_v3  ;;  %v432_v7 = vsel %vm362_vm0, %v331_v4, 0.0  ;;  %v288_v46 = vld [vmem:[%s2635_s23 + $0x130] sm:$0xff]  ;;  %v287_v47 = vld [vmem:[%s2635_s23 + $0x128] sm:$0xff]  ;;  %v286_v48 = vld [vmem:[%s2635_s23 + $0x120] sm:$0xff] }
  0x1b   : > { %367 = vadd.xlane.f32.xlu0 %v366_v18  ;;  %v429_v8 = vsel %vm362_vm0, %v330_v5, 0.0  ;;  %v334_v13 = vmul.f32 %v2627_v0, %v276_v10  ;;  %v333_v14 = vmul.f32 %v2627_v0, %v275_v11  ;;  %v332_v15 = vmul.f32 %v2627_v0, %v274_v12  ;;  %v291_v55 = vld [vmem:[%s2635_s23 + $0x148] sm:$0xff]  ;;  %v290_v56 = vld [vmem:[%s2635_s23 + $0x140] sm:$0xff]  ;;  %v289_v57 = vld [vmem:[%s2635_s23 + $0x138] sm:$0xff] }
  0x1c   : > { %v426_v9 = vsel %vm362_vm0, %v329_v6, 0.0  ;;  %v337_v22 = vmul.f32 %v2627_v0, %v279_v19  ;;  %v336_v23 = vmul.f32 %v2627_v0, %v278_v20  ;;  %v335_v24 = vmul.f32 %v2627_v0, %v277_v21  ;;  %v294_v1 = vld [vmem:[%s2635_s23 + $0x160] sm:$0xff]  ;;  %v293_v2 = vld [vmem:[%s2635_s23 + $0x158] sm:$0xff]  ;;  %v292_v3 = vld [vmem:[%s2635_s23 + $0x150] sm:$0xff] }
  0x1d   : > { %v441_v16 = vsel %vm362_vm0, %v334_v13, 0.0  ;;  %v438_v17 = vsel %vm362_vm0, %v333_v14, 0.0  ;;  %v435_v18 = vsel %vm362_vm0, %v332_v15, 0.0  ;;  %v340_v31 = vmul.f32 %v2627_v0, %v282_v28  ;;  %v297_v10 = vld [vmem:[%s2635_s23 + $0x178] sm:$0xff]  ;;  %v296_v11 = vld [vmem:[%s2635_s23 + $0x170] sm:$0xff]  ;;  %v295_v12 = vld [vmem:[%s2635_s23 + $0x168] sm:$0xff] }
  0x1e   : > { %v339_v32 = vmul.f32 %v2627_v0, %v281_v29  ;;  %v338_v33 = vmul.f32 %v2627_v0, %v280_v30  ;;  %v343_v40 = vmul.f32 %v2627_v0, %v285_v37  ;;  %v342_v41 = vmul.f32 %v2627_v0, %v284_v38  ;;  %v529_v13 = vld [vmem:[%s2777_s26 + $0x20] sm:$0xff]  ;;  %v527_v14 = vld [vmem:[%s2777_s26 + $0x10] sm:$0xff]  ;;  %v530_v37 = vld [vmem:[%s2777_s26 + $0x28] sm:$0xff] }
  0x1f   : > { %v341_v42 = vmul.f32 %v2627_v0, %v283_v39  ;;  %v346_v49 = vmul.f32 %v2627_v0, %v288_v46  ;;  %v345_v50 = vmul.f32 %v2627_v0, %v287_v47  ;;  %v344_v51 = vmul.f32 %v2627_v0, %v286_v48  ;;  %v300_v30 = vld [vmem:[%s2635_s23 + $0x190] sm:$0xff]  ;;  %v528_v38 = vld [vmem:[%s2777_s26 + $0x18] sm:$0xff] }
  0x20   : > { %v349_v58 = vmul.f32 %v2627_v0, %v291_v55  ;;  %v348_v59 = vmul.f32 %v2627_v0, %v290_v56  ;;  %v347_v60 = vmul.f32 %v2627_v0, %v289_v57  ;;  %v352_v4 = vmul.f32 %v2627_v0, %v294_v1  ;;  %v302_v55 = vld [vmem:[%s2635_s23 + $0x1a0] sm:$0xff]  ;;  %v301_v57 = vld [vmem:[%s2635_s23 + $0x198] sm:$0xff] }
  0x21   : > { %v351_v5 = vmul.f32 %v2627_v0, %v293_v2  ;;  %v350_v6 = vmul.f32 %v2627_v0, %v292_v3  ;;  %v355_v15 = vmul.f32 %v2627_v0, %v297_v10  ;;  %v358_v39 = vmul.f32 %v2627_v0, %v300_v30  ;;  %v536_v30 = vld [vmem:[%s2777_s26 + $0x58] sm:$0xff] }
  0x22   : > { %388 = vadd.xlane.f32.xlu2 %v387_v25  ;;  %385 = vadd.xlane.f32.xlu1 %v384_v26  ;;  %v450_v25 = vsel %vm362_vm0, %v337_v22, 0.0  ;;  %v447_v26 = vsel %vm362_vm0, %v336_v23, 0.0  ;;  %v360_v2 = vmul.f32 %v2627_v0, %v302_v55  ;;  %v2588_v3 = vmov 0  }
  0x23   : > { %382 = vadd.xlane.f32.xlu0 %v381_v27  ;;  %v444_v27 = vsel %vm362_vm0, %v335_v24, 0.0  ;;  %2362 = vset.pattern.permute.xlu2 %v2588_v3 }
  0x24   : > { %2360 = vset.pattern.permute.xlu0 %v2588_v3  ;;  %2361 = vset.pattern.permute.xlu1 %v2588_v3 }
  0x2a   : > { %397 = vadd.xlane.f32.xlu2 %v396_v34  ;;  %394 = vadd.xlane.f32.xlu1 %v393_v35  ;;  %v459_v34 = vsel %vm362_vm0, %v340_v31, 0.0  ;;  %v456_v35 = vsel %vm362_vm0, %v339_v32, 0.0  ;;  %v299_v31 = vld [vmem:[%s2635_s23 + $0x188] sm:$0xff] }
  0x2b   : > { %391 = vadd.xlane.f32.xlu0 %v390_v36  ;;  %v453_v36 = vsel %vm362_vm0, %v338_v33, 0.0  ;;  %v298_v33 = vld [vmem:[%s2635_s23 + $0x180] sm:$0xff] }
  0x32   : > { %406 = vadd.xlane.f32.xlu2 %v405_v43  ;;  %403 = vadd.xlane.f32.xlu1 %v402_v44  ;;  %v468_v43 = vsel %vm362_vm0, %v343_v40, 0.0  ;;  %v465_v44 = vsel %vm362_vm0, %v342_v41, 0.0  ;;  %v357_v40 = vmul.f32 %v2627_v0, %v299_v31  ;;  %v526_v41 = vld [vmem:[%s2777_s26 + $0x8] sm:$0xff]  ;;  %v535_v31 = vld [vmem:[%s2777_s26 + $0x50] sm:$0xff] }
  0x33   : > { %400 = vadd.xlane.f32.xlu0 %v399_v45  ;;  %v462_v45 = vsel %vm362_vm0, %v341_v42, 0.0  ;;  %v356_v42 = vmul.f32 %v2627_v0, %v298_v33  ;;  %v534_v33 = vld [vmem:[%s2777_s26 + $0x48] sm:$0xff] }
  0x3a   : > { %415 = vadd.xlane.f32.xlu2 %v414_v52  ;;  %412 = vadd.xlane.f32.xlu1 %v411_v53  ;;  %v477_v52 = vsel %vm362_vm0, %v346_v49, 0.0  ;;  %v474_v53 = vsel %vm362_vm0, %v345_v50, 0.0  ;;  %v513_v49 = vsel %vm362_vm0, %v358_v39, 0.0  ;;  %v510_v50 = vsel %vm362_vm0, %v357_v40, 0.0 }
  0x3b   : > { %409 = vadd.xlane.f32.xlu0 %v408_v54  ;;  %v471_v54 = vsel %vm362_vm0, %v344_v51, 0.0 }
  0x42   : > { %424 = vadd.xlane.f32.xlu2 %v423_v61  ;;  %421 = vadd.xlane.f32.xlu1 %v420_v62  ;;  %v486_v61 = vsel %vm362_vm0, %v349_v58, 0.0  ;;  %v483_v62 = vsel %vm362_vm0, %v348_v59, 0.0 }
  0x43   : > { %418 = vadd.xlane.f32.xlu0 %v417_v63  ;;  %v480_v63 = vsel %vm362_vm0, %v347_v60, 0.0 }
  0x4a   : > { %433 = vadd.xlane.f32.xlu2 %v432_v7  ;;  %430 = vadd.xlane.f32.xlu1 %v429_v8  ;;  %v495_v7 = vsel %vm362_vm0, %v352_v4, 0.0  ;;  %v492_v8 = vsel %vm362_vm0, %v351_v5, 0.0 }
  0x4b   : > { %427 = vadd.xlane.f32.xlu0 %v426_v9  ;;  %v489_v9 = vsel %vm362_vm0, %v350_v6, 0.0 }
  0x52   : > { %442 = vadd.xlane.f32.xlu2 %v441_v16  ;;  %439 = vadd.xlane.f32.xlu1 %v438_v17  ;;  %v354_v16 = vmul.f32 %v2627_v0, %v296_v11  ;;  %v525_v17 = vld [vmem:[%s2777_s26] sm:$0xff] }
  0x53   : > { %436 = vadd.xlane.f32.xlu0 %v435_v18  ;;  %v353_v18 = vmul.f32 %v2627_v0, %v295_v12 }
  0x55   : > { %v498_v29 = vsel %vm362_vm0, %v353_v18, 0.0 }
  0x5a   : > { %451 = vadd.xlane.f32.xlu2 %v450_v25  ;;  %448 = vadd.xlane.f32.xlu1 %v447_v26  ;;  %v504_v25 = vsel %vm362_vm0, %v355_v15, 0.0  ;;  %v501_v26 = vsel %vm362_vm0, %v354_v16, 0.0 }
  0x5b   : > { %445 = vadd.xlane.f32.xlu0 %v444_v27 }
  0x62   : > { %460 = vadd.xlane.f32.xlu2 %v459_v34  ;;  %457 = vadd.xlane.f32.xlu1 %v456_v35 }
  0x63   : > { %454 = vadd.xlane.f32.xlu0 %v453_v36 }
  0x6a   : > { %469 = vadd.xlane.f32.xlu2 %v468_v43  ;;  %466 = vadd.xlane.f32.xlu1 %v465_v44 }
  0x6b   : > { %463 = vadd.xlane.f32.xlu0 %v462_v45 }
  0x72   : > { %478 = vadd.xlane.f32.xlu2 %v477_v52  ;;  %475 = vadd.xlane.f32.xlu1 %v474_v53  ;;  %v507_v53 = vsel %vm362_vm0, %v356_v42, 0.0 }
  0x73   : > { %472 = vadd.xlane.f32.xlu0 %v471_v54  ;;  %v303_v54 = vld [vmem:[%s2635_s23 + $0x1a8] sm:$0xff] }
  0x74   : > { %v361_v1 = vmul.f32 %v2627_v0, %v303_v54 }
  0x7a   : > { %487 = vadd.xlane.f32.xlu2 %v486_v61  ;;  %484 = vadd.xlane.f32.xlu1 %v483_v62  ;;  %v533_v62 = vld [vmem:[%s2777_s26 + $0x40] sm:$0xff] }
  0x7b   : > { %481 = vadd.xlane.f32.xlu0 %v480_v63  ;;  %v532_v63 = vld [vmem:[%s2777_s26 + $0x38] sm:$0xff] }
  0x82   : > { %496 = vadd.xlane.f32.xlu2 %v495_v7  ;;  %493 = vadd.xlane.f32.xlu1 %v492_v8  ;;  %v531_v7 = vld [vmem:[%s2777_s26 + $0x30] sm:$0xff]  ;;  %v359_v8 = vmul.f32 %v2627_v0, %v301_v57  ;;  %v519_v0 = vsel %vm362_vm0, %v360_v2, 0.0 }
  0x83   : > { %490 = vadd.xlane.f32.xlu0 %v489_v9 }
  0x85   : > { %v377_v19 = vpop.xlane.xlu2 %376  ;;  %v371_v20 = vpop.xlane.xlu1 %370 }
  0x86   : > { %v583_v21 = vadd.f32 %v529_v13, %v377_v19  ;;  %v581_v22 = vadd.f32 %v527_v14, %v371_v20  ;;  %v365_v23 = vpop.xlane.xlu0 %364  ;;  %v516_v20 = vsel %vm362_vm0, %v359_v8, 0.0 }
  0x87   : > { %v579_v24 = vadd.f32 %v525_v17, %v365_v23  ;;  %v522_v17 = vsel %vm362_vm0, %v361_v1, 0.0 }
  0x88   : > { %v637_v27 = vsub.f32 0.0, %v583_v21  ;;  %v635_v28 = vsub.f32 0.0, %v581_v22 }
  0x89   : > { %v633_v32 = vsub.f32 0.0, %v579_v24 }
  0x8a   : > { %v695_v34 = vmul.f32 1.442695, %v637_v27  ;;  %v691_v35 = vmul.f32 1.442695, %v635_v28  ;;  %505 = vadd.xlane.f32.xlu2 %v504_v25  ;;  %502 = vadd.xlane.f32.xlu1 %v501_v26 }
  0x8b   : > { %v687_v36 = vmul.f32 1.442695, %v633_v32  ;;  %499 = vadd.xlane.f32.xlu0 %v498_v29 }
  0x8c   : > { %2364 = vpow2.f32 %v695_v34 }
  0x8d   : > { %2366 = vpow2.f32 %v691_v35  ;;  %v380_v43 = vpop.xlane.xlu2 %379  ;;  %v374_v44 = vpop.xlane.xlu1 %373 }
  0x8e   : > { %2368 = vpow2.f32 %v687_v36  ;;  %v584_v45 = vadd.f32 %v530_v37, %v380_v43  ;;  %v582_v46 = vadd.f32 %v528_v38, %v374_v44  ;;  %v368_v47 = vpop.xlane.xlu0 %367 }
  0x8f   : > { %v580_v48 = vadd.f32 %v526_v41, %v368_v47 }
  0x90   : > { %v638_v51 = vsub.f32 0.0, %v584_v45  ;;  %v636_v52 = vsub.f32 0.0, %v582_v46 }
  0x91   : > { %v634_v56 = vsub.f32 0.0, %v580_v48 }
  0x92   : > { %v2365_v58 = vpop.eup %2364  ;;  %v697_v59 = vmul.f32 1.442695, %v638_v51  ;;  %514 = vadd.xlane.f32.xlu2 %v513_v49  ;;  %511 = vadd.xlane.f32.xlu1 %v510_v50  ;;  %v693_v6 = vmul.f32 1.442695, %v636_v52 }
  0x93   : > { %v2367_v60 = vpop.eup %2366  ;;  %v2806_v61 = vadd.f32 1.0, %v2365_v58  ;;  %508 = vadd.xlane.f32.xlu0 %v507_v53  ;;  %v689_v10 = vmul.f32 1.442695, %v634_v56 }
  0x94   : > { %v2369_v4 = vpop.eup %2368  ;;  %v2812_v5 = vadd.f32 1.0, %v2367_v60  ;;  %2370 = vpow2.f32 %v697_v59 }
  0x95   : > { %2372 = vrcp.f32 %v2806_v61  ;;  %v2817_v9 = vadd.f32 1.0, %v2369_v4  ;;  %v389_v11 = vpop.xlane.xlu2 %388  ;;  %v386_v12 = vpop.xlane.xlu1 %385  ;;  %v918_v59 = vand.u32 2147483647, %v2806_v61  ;;  %v539_v4 = vld [vmem:[%s2777_s26 + $0x70] sm:$0xff] }
  0x96   : > { %2374 = vrcp.f32 %v2812_v5  ;;  %v587_v13 = vadd.f32 %v533_v62, %v389_v11  ;;  %v586_v14 = vadd.f32 %v532_v63, %v386_v12  ;;  %v383_v15 = vpop.xlane.xlu0 %382  ;;  %v890_v26 = vand.u32 2147483648, %v2812_v5  ;;  %v537_v11 = vld [vmem:[%s2777_s26 + $0x60] sm:$0xff] }
  0x97   : > { %2376 = vrcp.f32 %v2817_v9  ;;  %v585_v16 = vadd.f32 %v531_v7, %v383_v15  ;;  %v860_v22 = vand.u32 2147483648, %v2817_v9  ;;  %v858_v34 = vand.u32 2147483647, %v2817_v9 }
  0x98   : > { %2378 = vpow2.f32 %v693_v6  ;;  %v641_v18 = vsub.f32 0.0, %v587_v13  ;;  %v640_v19 = vsub.f32 0.0, %v586_v14  ;;  %vm884_vm1 = vweird.f32 %v2812_v5  ;;  %v538_v6 = vld [vmem:[%s2777_s26 + $0x68] sm:$0xff] }
  0x99   : > { %2380 = vpow2.f32 %v689_v10  ;;  %v639_v21 = vsub.f32 0.0, %v585_v16  ;;  %v888_v35 = vand.u32 2147483647, %v2812_v5  ;;  %vm854_vm2 = vweird.f32 %v2817_v9 }
  0x9a   : > { %v2371_v23 = vpop.eup %2370  ;;  %v703_v24 = vmul.f32 1.442695, %v641_v18  ;;  %v701_v25 = vmul.f32 1.442695, %v640_v19  ;;  %523 = vadd.xlane.f32.xlu2 %v522_v17  ;;  %520 = vadd.xlane.f32.xlu1 %v519_v0  ;;  %v2842_v39 = vor.u32 1.1754944e-38, %v860_v22  ;;  %v2846_v41 = vor.u32 1.1754944e-38, %v890_v26 }
  0x9b   : > { %v2826_v27 = vpop.eup %2372  ;;  %v2828_v28 = vadd.f32 1.0, %v2371_v23  ;;  %v699_v29 = vmul.f32 1.442695, %v639_v21  ;;  %517 = vadd.xlane.f32.xlu0 %v516_v20  ;;  %vm2858_vm3 = vcmp.eq.f32.partialorder %v858_v34, 8.507059e+37  ;;  %vm2863_vm5 = vcmp.eq.f32.partialorder %v888_v35, 8.507059e+37 }
  0x9c   : > { %v2832_v32 = vpop.eup %2374  ;;  %2382 = vpow2.f32 %v703_v24  ;;  %v2854_v50 = vmul.f32 %v2826_v27, %v2806_v61 }
  0x9d   : > { %v2838_v36 = vpop.eup %2376  ;;  %2384 = vrcp.f32 %v2828_v28  ;;  %v398_v37 = vpop.xlane.xlu2 %397  ;;  %v880_v40 = vmul.f32 %v2832_v32, %v2812_v5  ;;  %vm885_vm4 = vweird.f32 %v2832_v32 }
  0x9e   : > { %v395_v38 = vpop.xlane.xlu1 %394  ;;  %v2379_v42 = vpop.eup %2378  ;;  %2386 = vpow2.f32 %v701_v25  ;;  %v590_v43 = vadd.f32 %v536_v30, %v398_v37  ;;  %v850_v46 = vmul.f32 %v2838_v36, %v2817_v9  ;;  %vm855_vm6 = vweird.f32 %v2838_v36  ;;  %vm2890_vm7 = vmor %vm884_vm1, %vm885_vm4 }
  0x9f   : > { %v589_v44 = vadd.f32 %v535_v31, %v395_v38  ;;  %v392_v45 = vpop.xlane.xlu0 %391  ;;  %v2381_v47 = vpop.eup %2380  ;;  %v2850_v48 = vadd.f32 1.0, %v2379_v42  ;;  %2388 = vpow2.f32 %v699_v29  ;;  %v881_v57 = vsub.f32 1.0, %v880_v40  ;;  %vm856_vm8 = vmor %vm854_vm2, %vm855_vm6  ;;  %v542_v38 = vld [vmem:[%s2777_s26 + $0x88] sm:$0xff] }
  0xa0   : > { %v588_v49 = vadd.f32 %v534_v33, %v392_v45  ;;  %v2856_v51 = vadd.f32 1.0, %v2381_v47  ;;  %v644_v52 = vsub.f32 0.0, %v590_v43  ;;  %v851_v54 = vsub.f32 1.0, %v850_v46 }
  0xa1   : > { %v643_v53 = vsub.f32 0.0, %v589_v44  ;;  %v882_v7 = vmul.f32 %v2832_v32, %v881_v57  ;;  %v903_v9 = vand.u32 2147483647, %v2850_v48  ;;  %vm899_vm0 = vweird.f32 %v2850_v48 }
  0xa2   : > { %v642_v56 = vsub.f32 0.0, %v588_v49  ;;  %v2383_v60 = vpop.eup %2382  ;;  %2390 = vrcp.f32 %v2856_v51  ;;  %v709_v62 = vmul.f32 1.442695, %v644_v52  ;;  %v852_v1 = vmul.f32 %v2838_v36, %v851_v54  ;;  %v540_v49 = vld [vmem:[%s2777_s26 + $0x78] sm:$0xff] }
  0xa3   : > { %v707_v63 = vmul.f32 1.442695, %v643_v53  ;;  %v2870_v2 = vpop.eup %2384  ;;  %2392 = vrcp.f32 %v2850_v48  ;;  %v2873_v3 = vadd.f32 1.0, %v2383_v60  ;;  %v873_v13 = vand.u32 2147483647, %v2856_v51 }
  0xa4   : > { %v2387_v8 = vpop.eup %2386  ;;  %2394 = vpow2.f32 %v709_v62  ;;  %v705_v10 = vmul.f32 1.442695, %v642_v56  ;;  %v853_v12 = vadd.f32 %v2838_v36, %v852_v1  ;;  %v883_v0 = vadd.f32 %v2832_v32, %v882_v7 }
  0xa5   : > { %v2389_v14 = vpop.eup %2388  ;;  %2396 = vrcp.f32 %v2873_v3  ;;  %v2883_v15 = vadd.f32 1.0, %v2387_v8  ;;  %v407_v16 = vpop.xlane.xlu2 %406  ;;  %v875_v19 = vand.u32 2147483648, %v2856_v51  ;;  %vm869_vm9 = vweird.f32 %v2856_v51 }
  0xa6   : > { %v404_v17 = vpop.xlane.xlu1 %403  ;;  %v2895_v20 = vadd.f32 1.0, %v2389_v14  ;;  %2398 = vpow2.f32 %v707_v63  ;;  %v593_v21 = vadd.f32 %v539_v4, %v407_v16  ;;  %v857_v24 = vsel %vm856_vm8, %v2838_v36, %v853_v12 }
  0xa7   : > { %v592_v22 = vadd.f32 %v538_v6, %v404_v17  ;;  %v401_v23 = vpop.xlane.xlu0 %400  ;;  %2400 = vrcp.f32 %v2883_v15  ;;  %v887_v25 = vsel %vm2890_vm7, %v2832_v32, %v883_v0  ;;  %v862_v34 = vsel %vm2858_vm3, %v2842_v39, %v857_v24  ;;  %v541_v39 = vld [vmem:[%s2777_s26 + $0x80] sm:$0xff]  ;;  %v546_v0 = vld [vmem:[%s2777_s26 + $0xa8] sm:$0xff] }
  0xa8   : > { %v591_v5 = vadd.f32 %v537_v11, %v401_v23  ;;  %v2907_v26 = vpop.eup %2390  ;;  %2402 = vrcp.f32 %v2895_v20  ;;  %v647_v29 = vsub.f32 0.0, %v593_v21  ;;  %v892_v40 = vsel %vm2863_vm5, %v2846_v41, %v887_v25  ;;  %v545_v24 = vld [vmem:[%s2777_s26 + $0xa0] sm:$0xff]  ;;  %v544_v25 = vld [vmem:[%s2777_s26 + $0x98] sm:$0xff] }
  0xa9   : > { %v646_v30 = vsub.f32 0.0, %v592_v22  ;;  %v2911_v31 = vpop.eup %2392  ;;  %2404 = vpow2.f32 %v705_v10  ;;  %v865_v32 = vmul.f32 %v2907_v26, %v2856_v51  ;;  %vm870_vm10 = vweird.f32 %v2907_v26 }
  0xaa   : > { %v645_v33 = vsub.f32 0.0, %v591_v5  ;;  %v2395_v35 = vpop.eup %2394  ;;  %v715_v36 = vmul.f32 1.442695, %v647_v29  ;;  %vm2928_vm11 = vcmp.eq.f32.partialorder %v873_v13, 8.507059e+37  ;;  %v876_v52 = vor.u32 1.1754944e-38, %v875_v19  ;;  %vm871_vm14 = vmor %vm869_vm9, %vm870_vm10 }
  0xab   : > { %v713_v37 = vmul.f32 1.442695, %v646_v30  ;;  %v2923_v42 = vpop.eup %2396  ;;  %v2925_v43 = vadd.f32 1.0, %v2395_v35  ;;  %v866_v45 = vsub.f32 1.0, %v865_v32  ;;  %v963_v53 = vand.u32 2147483647, %v2883_v15 }
  0xac   : > { %v711_v44 = vmul.f32 1.442695, %v645_v33  ;;  %v2399_v47 = vpop.eup %2398  ;;  %2406 = vpow2.f32 %v715_v36  ;;  %v965_v41 = vand.u32 2147483648, %v2883_v15  ;;  %vm959_vm12 = vweird.f32 %v2883_v15  ;;  %v543_v33 = vld [vmem:[%s2777_s26 + $0x90] sm:$0xff] }
  0xad   : > { %v2935_v54 = vpop.eup %2400  ;;  %2408 = vrcp.f32 %v2925_v43  ;;  %v2938_v55 = vadd.f32 1.0, %v2399_v47  ;;  %v416_v56 = vpop.xlane.xlu2 %415  ;;  %v867_v58 = vmul.f32 %v2907_v26, %v866_v45  ;;  %v895_v60 = vmul.f32 %v2911_v31, %v2850_v48 }
  0xae   : > { %v413_v57 = vpop.xlane.xlu1 %412  ;;  %v2944_v62 = vpop.eup %2402  ;;  %2410 = vpow2.f32 %v713_v37  ;;  %v596_v63 = vadd.f32 %v542_v38, %v416_v56  ;;  %v955_v6 = vmul.f32 %v2935_v54, %v2883_v15  ;;  %vm960_vm13 = vweird.f32 %v2935_v54 }
  0xaf   : > { %v595_v1 = vadd.f32 %v541_v39, %v413_v57  ;;  %v410_v4 = vpop.xlane.xlu0 %409  ;;  %v2405_v7 = vpop.eup %2404  ;;  %2412 = vrcp.f32 %v2938_v55  ;;  %1769 = vperm.xlu0 %2360, %v862_v34   ;;  %v868_v10 = vadd.f32 %v2907_v26, %v867_v58  ;;  %vm2958_vm15 = vcmp.eq.f32.partialorder %v963_v53, 8.507059e+37  ;;  %vm961_vm5 = vmor %vm959_vm12, %vm960_vm13 }
  0xb0   : > { %v594_v8 = vadd.f32 %v540_v49, %v410_v4  ;;  %v2951_v11 = vadd.f32 1.0, %v2405_v7  ;;  %2414 = vpow2.f32 %v711_v44  ;;  %v650_v12 = vsub.f32 0.0, %v596_v63 }
  0xb1   : > { %v649_v13 = vsub.f32 0.0, %v595_v1  ;;  %v872_v16 = vsel %vm871_vm14, %v2907_v26, %v868_v10  ;;  %v956_v17 = vsub.f32 1.0, %v955_v6  ;;  %v966_v29 = vor.u32 1.1754944e-38, %v965_v41 }
  0xb2   : > { %v648_v14 = vsub.f32 0.0, %v594_v8  ;;  %v2407_v18 = vpop.eup %2406  ;;  %2416 = vrcp.f32 %v2951_v11  ;;  %v721_v19 = vmul.f32 1.442695, %v650_v12  ;;  %1779 = vperm.xlu2 %2362, %v892_v40   ;;  %v877_v51 = vsel %vm2928_vm11, %v876_v52, %v872_v16  ;;  %v548_v16 = vld [vmem:[%s2777_s26 + $0xb8] sm:$0xff] }
  0xb3   : > { %v719_v21 = vmul.f32 1.442695, %v649_v13  ;;  %v2966_v22 = vpop.eup %2408  ;;  %v2968_v23 = vadd.f32 1.0, %v2407_v18  ;;  %1774 = vperm.xlu1 %2361, %v877_v51   ;;  %v957_v26 = vmul.f32 %v2935_v54, %v956_v17  ;;  %v896_v34 = vsub.f32 1.0, %v895_v60 }
  0xb4   : > { %v717_v5 = vmul.f32 1.442695, %v648_v14  ;;  %v2411_v30 = vpop.eup %2410  ;;  %2418 = vpow2.f32 %v721_v19  ;;  %vm900_vm1 = vweird.f32 %v2911_v31  ;;  %vm2977_vm2 = vcmp.eq.f32.partialorder %v903_v9, 8.507059e+37 }
  0xb5   : > { %vm914_vm3 = vweird.f32 %v2806_v61  ;;  %vm915_vm4 = vweird.f32 %v2826_v27  ;;  %v2983_v35 = vpop.eup %2412  ;;  %2420 = vrcp.f32 %v2968_v23  ;;  %v2986_v36 = vadd.f32 1.0, %v2411_v30  ;;  %v425_v37 = vpop.xlane.xlu2 %424  ;;  %vm901_vm6 = vmor %vm899_vm0, %vm900_vm1 }
  0xb6   : > { %v422_v38 = vpop.xlane.xlu1 %421  ;;  %v958_v40 = vadd.f32 %v2935_v54, %v957_v26  ;;  %v905_v44 = vand.u32 2147483648, %v2850_v48  ;;  %v2415_v9 = vpop.eup %2414  ;;  %2422 = vpow2.f32 %v719_v21  ;;  %v599_v39 = vadd.f32 %v545_v24, %v425_v37  ;;  %v547_v48 = vld [vmem:[%s2777_s26 + $0xb0] sm:$0xff]  ;;  %vm916_vm9 = vmor %vm914_vm3, %vm915_vm4 }
  0xb7   : > { %v598_v45 = vadd.f32 %v544_v25, %v422_v38  ;;  %v419_v46 = vpop.xlane.xlu0 %418  ;;  %v897_v47 = vmul.f32 %v2911_v31, %v896_v34  ;;  %2424 = vrcp.f32 %v2986_v36  ;;  %v2996_v49 = vadd.f32 1.0, %v2415_v9 }
  0xb8   : > { %v597_v52 = vadd.f32 %v543_v33, %v419_v46  ;;  %v962_v53 = vsel %vm961_vm5, %v2935_v54, %v958_v40  ;;  %v2999_v41 = vpop.eup %2416  ;;  %2426 = vpow2.f32 %v717_v5  ;;  %v653_v56 = vsub.f32 0.0, %v599_v39 }
  0xb9   : > { %v652_v57 = vsub.f32 0.0, %v598_v45  ;;  %v967_v58 = vsel %vm2958_vm15, %v966_v29, %v962_v53  ;;  %2428 = vrcp.f32 %v2996_v49  ;;  %v898_v60 = vadd.f32 %v2911_v31, %v897_v47 }
  0xba   : > { %v651_v15 = vsub.f32 0.0, %v597_v52  ;;  %1804 = vperm.xlu0 %2360, %v967_v58   ;;  %v906_v63 = vor.u32 1.1754944e-38, %v905_v44  ;;  %v2419_v1 = vpop.eup %2418  ;;  %v727_v4 = vmul.f32 1.442695, %v653_v56  ;;  %v911_v6 = vsub.f32 1.0, %v2854_v50 }
  0xbb   : > { %v725_v54 = vmul.f32 1.442695, %v652_v57  ;;  %vm3012_vm7 = vcmp.eq.f32.partialorder %v918_v59, 8.507059e+37  ;;  %v3016_v8 = vpop.eup %2420  ;;  %v3018_v10 = vadd.f32 1.0, %v2419_v1  ;;  %v902_v13 = vsel %vm901_vm6, %v2911_v31, %v898_v60 }
  0xbc   : > { %v723_v12 = vmul.f32 1.442695, %v651_v15  ;;  %v920_v14 = vand.u32 2147483648, %v2806_v61  ;;  %v2423_v17 = vpop.eup %2422  ;;  %2430 = vpow2.f32 %v727_v4  ;;  %v907_v50 = vsel %vm2977_vm2, %v906_v63, %v902_v13 }
  0xbd   : > { %v912_v59 = vmul.f32 %v2826_v27, %v911_v6  ;;  %v1000_v18 = vmul.f32 %v2983_v35, %v2938_v55  ;;  %v3030_v19 = vpop.eup %2424  ;;  %2432 = vrcp.f32 %v3018_v10  ;;  %v3033_v31 = vadd.f32 1.0, %v2423_v17  ;;  %1784 = vperm.xlu2 %2362, %v907_v50   ;;  %v434_v51 = vpop.xlane.xlu2 %433 }
  0xbe   : > { %v921_v21 = vor.u32 1.1754944e-38, %v920_v14  ;;  %v431_v5 = vpop.xlane.xlu1 %430  ;;  %vm1004_vm8 = vweird.f32 %v2938_v55  ;;  %v2427_v24 = vpop.eup %2426  ;;  %2434 = vpow2.f32 %v725_v54  ;;  %v602_v26 = vadd.f32 %v548_v16, %v434_v51 }
  0xbf   : > { %v913_v25 = vadd.f32 %v2826_v27, %v912_v59  ;;  %v601_v29 = vadd.f32 %v547_v48, %v431_v5  ;;  %v428_v30 = vpop.xlane.xlu0 %427  ;;  %v3037_v33 = vpop.eup %2428  ;;  %2436 = vrcp.f32 %v3033_v31  ;;  %v3040_v34 = vadd.f32 1.0, %v2427_v24  ;;  %v549_v5 = vld [vmem:[%s2777_s26 + $0xc0] sm:$0xff] }
  0xc0   : > { %v600_v32 = vadd.f32 %v546_v0, %v428_v30  ;;  %v1001_v37 = vsub.f32 1.0, %v1000_v18  ;;  %2438 = vpow2.f32 %v723_v12  ;;  %v656_v40 = vsub.f32 0.0, %v602_v26  ;;  %v551_v18 = vld [vmem:[%s2777_s26 + $0xd0] sm:$0xff] }
  0xc1   : > { %v917_v38 = vsel %vm916_vm9, %v2826_v27, %v913_v25  ;;  %v655_v44 = vsub.f32 0.0, %v601_v29  ;;  %2440 = vrcp.f32 %v3040_v34  ;;  %vm1005_vm10 = vweird.f32 %v2983_v35 }
  0xc2   : > { %v922_v9 = vsel %vm3012_vm7, %v921_v21, %v917_v38  ;;  %v654_v39 = vsub.f32 0.0, %v600_v32  ;;  %v1002_v45 = vmul.f32 %v2983_v35, %v1001_v37  ;;  %v2431_v46 = vpop.eup %2430  ;;  %v733_v47 = vmul.f32 1.442695, %v656_v40  ;;  %vm3061_vm11 = vmor %vm1004_vm8, %vm1005_vm10  ;;  %v550_v21 = vld [vmem:[%s2777_s26 + $0xc8] sm:$0xff] }
  0xc3   : > { %1789 = vperm.xlu1 %2361, %v922_v9   ;;  %v731_v61 = vmul.f32 1.442695, %v655_v44  ;;  %v1008_v52 = vand.u32 2147483647, %v2938_v55  ;;  %v3053_v53 = vpop.eup %2432  ;;  %v3055_v27 = vadd.f32 1.0, %v2431_v46  ;;  %v1010_v58 = vand.u32 2147483648, %v2938_v55 }
  0xc4   : > { %v729_v56 = vmul.f32 1.442695, %v654_v39  ;;  %v1003_v57 = vadd.f32 %v2983_v35, %v1002_v45  ;;  %v2435_v15 = vpop.eup %2434  ;;  %2442 = vpow2.f32 %v733_v47  ;;  %v925_v1 = vmul.f32 %v2870_v2, %v2828_v28 }
  0xc5   : > { %vm3065_vm12 = vcmp.eq.f32.partialorder %v1008_v52, 8.507059e+37  ;;  %vm929_vm13 = vweird.f32 %v2828_v28  ;;  %v3072_v4 = vpop.eup %2436  ;;  %2444 = vrcp.f32 %v3055_v27  ;;  %v3075_v54 = vadd.f32 1.0, %v2435_v15  ;;  %v443_v17 = vpop.xlane.xlu2 %442 }
  0xc6   : > { %v1007_v55 = vsel %vm3061_vm11, %v2983_v35, %v1003_v57  ;;  %v1011_v6 = vor.u32 1.1754944e-38, %v1010_v58  ;;  %v2439_v7 = vpop.eup %2438  ;;  %2446 = vpow2.f32 %v731_v61  ;;  %v926_v12 = vsub.f32 1.0, %v925_v1  ;;  %v440_v51 = vpop.xlane.xlu1 %439 }
  0xc7   : > { %vm930_vm14 = vweird.f32 %v2870_v2  ;;  %v933_v13 = vand.u32 2147483647, %v2828_v28  ;;  %v3082_v14 = vpop.eup %2440  ;;  %2448 = vrcp.f32 %v3075_v54  ;;  %v3085_v16 = vadd.f32 1.0, %v2439_v7  ;;  %v437_v24 = vpop.xlane.xlu0 %436 }
  0xc8   : > { %v1012_v35 = vsel %vm3065_vm12, %v1011_v6, %v1007_v55  ;;  %v935_v48 = vand.u32 2147483648, %v2828_v28  ;;  %2450 = vpow2.f32 %v729_v56  ;;  %v927_v50 = vmul.f32 %v2870_v2, %v926_v12  ;;  %vm931_vm2 = vmor %vm929_vm13, %vm930_vm14 }
  0xc9   : > { %1819 = vperm.xlu0 %2360, %v1012_v35   ;;  %vm3091_vm15 = vcmp.eq.f32.partialorder %v933_v13, 8.507059e+37  ;;  %v940_v0 = vmul.f32 %v2944_v62, %v2895_v20  ;;  %2452 = vrcp.f32 %v3085_v16  ;;  %vm944_vm0 = vweird.f32 %v2895_v20 }
  0xca   : > { %v936_v25 = vor.u32 1.1754944e-38, %v935_v48  ;;  %vm945_vm1 = vweird.f32 %v2944_v62  ;;  %v2443_v26 = vpop.eup %2442  ;;  %v928_v29 = vadd.f32 %v2870_v2, %v927_v50  ;;  %v948_v32 = vand.u32 2147483647, %v2895_v20 }
  0xcb   : > { %v941_v30 = vsub.f32 1.0, %v940_v0  ;;  %v950_v37 = vand.u32 2147483648, %v2895_v20  ;;  %v3106_v38 = vpop.eup %2444  ;;  %v3108_v40 = vadd.f32 1.0, %v2443_v26  ;;  %v605_v44 = vadd.f32 %v551_v18, %v443_v17  ;;  %vm3131_vm4 = vmor %vm944_vm0, %vm945_vm1 }
  0xcc   : > { %v604_v9 = vadd.f32 %v550_v21, %v440_v51  ;;  %v603_v39 = vadd.f32 %v549_v5, %v437_v24  ;;  %v2447_v45 = vpop.eup %2446  ;;  %v932_v46 = vsel %vm931_vm2, %v2870_v2, %v928_v29  ;;  %vm3116_vm3 = vcmp.eq.f32.partialorder %v948_v32, 8.507059e+37 }
  0xcd   : > { %v942_v47 = vmul.f32 %v2944_v62, %v941_v30  ;;  %v951_v52 = vor.u32 1.1754944e-38, %v950_v37  ;;  %v3120_v56 = vpop.eup %2448  ;;  %2454 = vrcp.f32 %v3108_v40  ;;  %v3123_v57 = vadd.f32 1.0, %v2447_v45  ;;  %v554_v37 = vld [vmem:[%s2777_s26 + $0xe8] sm:$0xff]  ;;  %v553_v45 = vld [vmem:[%s2777_s26 + $0xe0] sm:$0xff] }
  0xce   : > { %v937_v28 = vsel %vm3091_vm15, %v936_v25, %v932_v46  ;;  %v659_v58 = vsub.f32 0.0, %v605_v44  ;;  %v2451_v15 = vpop.eup %2450  ;;  %v658_v63 = vsub.f32 0.0, %v604_v9  ;;  %v657_v1 = vsub.f32 0.0, %v603_v39  ;;  %v452_v44 = vpop.xlane.xlu2 %451 }
  0xcf   : > { %1794 = vperm.xlu2 %2362, %v937_v28   ;;  %v943_v60 = vadd.f32 %v2944_v62, %v942_v47  ;;  %v1045_v55 = vmul.f32 %v3030_v19, %v2986_v36  ;;  %v3138_v6 = vpop.eup %2452  ;;  %2456 = vrcp.f32 %v3123_v57  ;;  %v3141_v7 = vadd.f32 1.0, %v2451_v15  ;;  %v449_v46 = vpop.xlane.xlu1 %448  ;;  %v552_v47 = vld [vmem:[%s2777_s26 + $0xd8] sm:$0xff] }
  0xd0   : > { %v739_v20 = vmul.f32 1.442695, %v659_v58  ;;  %vm1049_vm5 = vweird.f32 %v2986_v36  ;;  %v737_v13 = vmul.f32 1.442695, %v658_v63  ;;  %v735_v35 = vmul.f32 1.442695, %v657_v1  ;;  %v446_v61 = vpop.xlane.xlu0 %445 }
  0xd1   : > { %v947_v12 = vsel %vm3131_vm4, %v2944_v62, %v943_v60  ;;  %v1046_v48 = vsub.f32 1.0, %v1045_v55  ;;  %2458 = vrcp.f32 %v3141_v7  ;;  %vm1050_vm6 = vweird.f32 %v3030_v19 }
  0xd2   : > { %v952_v17 = vsel %vm3116_vm3, %v951_v52, %v947_v12  ;;  %v1053_v50 = vand.u32 2147483647, %v2986_v36  ;;  %2460 = vpow2.f32 %v739_v20  ;;  %v1055_v0 = vand.u32 2147483648, %v2986_v36  ;;  %vm3171_vm10 = vmor %vm1049_vm5, %vm1050_vm6 }
  0xd3   : > { %1799 = vperm.xlu1 %2361, %v952_v17   ;;  %v1047_v59 = vmul.f32 %v3030_v19, %v1046_v48  ;;  %v970_v62 = vmul.f32 %v2923_v42, %v2873_v3  ;;  %v3156_v18 = vpop.eup %2454  ;;  %2462 = vpow2.f32 %v737_v13  ;;  %vm974_vm8 = vweird.f32 %v2873_v3 }
  0xd4   : > { %vm3158_vm7 = vcmp.eq.f32.partialorder %v1053_v50, 8.507059e+37  ;;  %vm975_vm9 = vweird.f32 %v2923_v42  ;;  %2464 = vpow2.f32 %v735_v35  ;;  %v1056_v5 = vor.u32 1.1754944e-38, %v1055_v0 }
  0xd5   : > { %v1048_v51 = vadd.f32 %v3030_v19, %v1047_v59  ;;  %v971_v24 = vsub.f32 1.0, %v970_v62  ;;  %v3165_v25 = vpop.eup %2456  ;;  %v978_v29 = vand.u32 2147483647, %v2873_v3  ;;  %v980_v30 = vand.u32 2147483648, %v2873_v3  ;;  %vm976_vm15 = vmor %vm974_vm8, %vm975_vm9 }
  0xd6   : > { %v985_v32 = vmul.f32 %v2999_v41, %v2951_v11  ;;  %vm989_vm11 = vweird.f32 %v2951_v11  ;;  %vm990_vm12 = vweird.f32 %v2999_v41  ;;  %v993_v39 = vand.u32 2147483647, %v2951_v11 }
  0xd7   : > { %v1052_v9 = vsel %vm3171_vm10, %v3030_v19, %v1048_v51  ;;  %v972_v36 = vmul.f32 %v2923_v42, %v971_v24  ;;  %v3189_v52 = vpop.eup %2458  ;;  %vm3193_vm13 = vcmp.eq.f32.partialorder %v978_v29, 8.507059e+37  ;;  %v981_v19 = vor.u32 1.1754944e-38, %v980_v30  ;;  %vm3217_vm0 = vmor %vm989_vm11, %vm990_vm12  ;;  %v458_v0 = vpop.xlane.xlu1 %457 }
  0xd8   : > { %v1057_v28 = vsel %vm3158_vm7, %v1056_v5, %v1052_v9  ;;  %v986_v58 = vsub.f32 1.0, %v985_v32  ;;  %v2461_v15 = vpop.eup %2460  ;;  %vm3198_vm14 = vcmp.eq.f32.partialorder %v993_v39, 8.507059e+37  ;;  %v995_v1 = vand.u32 2147483648, %v2951_v11 }
  0xd9   : > { %1834 = vperm.xlu0 %2360, %v1057_v28   ;;  %v973_v60 = vadd.f32 %v2923_v42, %v972_v36  ;;  %v608_v55 = vadd.f32 %v554_v37, %v452_v44  ;;  %v2463_v20 = vpop.eup %2462  ;;  %v3203_v12 = vadd.f32 1.0, %v2461_v15  ;;  %v607_v35 = vadd.f32 %v553_v45, %v449_v46 }
  0xda   : > { %v987_v13 = vmul.f32 %v2999_v41, %v986_v58  ;;  %v606_v48 = vadd.f32 %v552_v47, %v446_v61  ;;  %v2465_v17 = vpop.eup %2464  ;;  %v3210_v50 = vadd.f32 1.0, %v2463_v20  ;;  %v996_v62 = vor.u32 1.1754944e-38, %v995_v1  ;;  %v557_v1 = vld [vmem:[%s2777_s26 + $0x100] sm:$0xff] }
  0xdb   : > { %v977_v59 = vsel %vm976_vm15, %v2923_v42, %v973_v60  ;;  %v662_v3 = vsub.f32 0.0, %v608_v55  ;;  %2466 = vrcp.f32 %v3203_v12  ;;  %v3222_v21 = vadd.f32 1.0, %v2465_v17  ;;  %v461_v55 = vpop.xlane.xlu2 %460 }
  0xdc   : > { %v982_v51 = vsel %vm3193_vm13, %v981_v19, %v977_v59  ;;  %v988_v5 = vadd.f32 %v2999_v41, %v987_v13  ;;  %2468 = vrcp.f32 %v3210_v50  ;;  %v661_v11 = vsub.f32 0.0, %v607_v35  ;;  %v556_v59 = vld [vmem:[%s2777_s26 + $0xf8] sm:$0xff] }
  0xdd   : > { %1809 = vperm.xlu2 %2362, %v982_v51   ;;  %v745_v42 = vmul.f32 1.442695, %v662_v3  ;;  %v660_v24 = vsub.f32 0.0, %v606_v48  ;;  %2470 = vrcp.f32 %v3222_v21  ;;  %v1090_v29 = vmul.f32 %v3072_v4, %v3033_v31 }
  0xde   : > { %v992_v26 = vsel %vm3217_vm0, %v2999_v41, %v988_v5  ;;  %vm1094_vm1 = vweird.f32 %v3033_v31  ;;  %v743_v32 = vmul.f32 1.442695, %v661_v11  ;;  %vm1095_vm2 = vweird.f32 %v3072_v4 }
  0xdf   : > { %v997_v30 = vsel %vm3198_vm14, %v996_v62, %v992_v26  ;;  %2472 = vpow2.f32 %v745_v42  ;;  %v741_v37 = vmul.f32 1.442695, %v660_v24  ;;  %v1091_v44 = vsub.f32 1.0, %v1090_v29  ;;  %vm1096_vm8 = vmor %vm1094_vm1, %vm1095_vm2  ;;  %v555_v29 = vld [vmem:[%s2777_s26 + $0xf0] sm:$0xff] }
  0xe0   : > { %1814 = vperm.xlu1 %2361, %v997_v30   ;;  %v1098_v9 = vand.u32 2147483647, %v3033_v31  ;;  %v1100_v36 = vand.u32 2147483648, %v3033_v31  ;;  %2474 = vpow2.f32 %v743_v32  ;;  %v1015_v41 = vmul.f32 %v2966_v22, %v2925_v43  ;;  %v455_v30 = vpop.xlane.xlu0 %454 }
  0xe1   : > { %vm1019_vm3 = vweird.f32 %v2925_v43  ;;  %vm1020_vm4 = vweird.f32 %v2966_v22  ;;  %v3244_v39 = vpop.eup %2466  ;;  %2476 = vpow2.f32 %v741_v37  ;;  %v1092_v45 = vmul.f32 %v3072_v4, %v1091_v44 }
  0xe2   : > { %vm3247_vm5 = vcmp.eq.f32.partialorder %v1098_v9, 8.507059e+37  ;;  %v1101_v47 = vor.u32 1.1754944e-38, %v1100_v36  ;;  %v3251_v61 = vpop.eup %2468  ;;  %v1016_v28 = vsub.f32 1.0, %v1015_v41  ;;  %v1023_v2 = vand.u32 2147483647, %v2925_v43  ;;  %vm3289_vm11 = vmor %vm1019_vm3, %vm1020_vm4 }
  0xe3   : > { %v1025_v19 = vand.u32 2147483648, %v2925_v43  ;;  %v1030_v58 = vmul.f32 %v3037_v33, %v2996_v49  ;;  %v3257_v15 = vpop.eup %2470  ;;  %v1093_v60 = vadd.f32 %v3072_v4, %v1092_v45  ;;  %vm1034_vm6 = vweird.f32 %v2996_v49 }
  0xe4   : > { %vm1035_vm7 = vweird.f32 %v3037_v33  ;;  %v1038_v63 = vand.u32 2147483647, %v2996_v49  ;;  %v1017_v13 = vmul.f32 %v2966_v22, %v1016_v28  ;;  %vm3269_vm9 = vcmp.eq.f32.partialorder %v1023_v2, 8.507059e+37 }
  0xe5   : > { %v2473_v20 = vpop.eup %2472  ;;  %v1026_v48 = vor.u32 1.1754944e-38, %v1025_v19  ;;  %v1031_v17 = vsub.f32 1.0, %v1030_v58  ;;  %v1097_v3 = vsel %vm1096_vm8, %v3072_v4, %v1093_v60  ;;  %v1040_v31 = vand.u32 2147483648, %v2996_v49  ;;  %vm3302_vm12 = vmor %vm1034_vm6, %vm1035_vm7 }
  0xe6   : > { %v3274_v62 = vadd.f32 1.0, %v2473_v20  ;;  %vm3277_vm10 = vcmp.eq.f32.partialorder %v1038_v63, 8.507059e+37  ;;  %v2475_v5 = vpop.eup %2474  ;;  %v1102_v42 = vsel %vm3247_vm5, %v1101_v47, %v1097_v3  ;;  %v1018_v11 = vadd.f32 %v2966_v22, %v1017_v13 }
  0xe7   : > { %v1032_v4 = vmul.f32 %v3037_v33, %v1031_v17  ;;  %v611_v26 = vadd.f32 %v557_v1, %v461_v55  ;;  %v2477_v32 = vpop.eup %2476  ;;  %v3296_v37 = vadd.f32 1.0, %v2475_v5  ;;  %1849 = vperm.xlu0 %2360, %v1102_v42   ;;  %v1041_v44 = vor.u32 1.1754944e-38, %v1040_v31 }
  0xe8   : > { %2478 = vrcp.f32 %v3274_v62  ;;  %v610_v9 = vadd.f32 %v556_v59, %v458_v0  ;;  %v3306_v36 = vadd.f32 1.0, %v2477_v32  ;;  %v1022_v41 = vsel %vm3289_vm11, %v2966_v22, %v1018_v11  ;;  %v470_v32 = vpop.xlane.xlu2 %469 }
  0xe9   : > { %v1033_v45 = vadd.f32 %v3037_v33, %v1032_v4  ;;  %v665_v46 = vsub.f32 0.0, %v611_v26  ;;  %2480 = vrcp.f32 %v3296_v37  ;;  %v1027_v49 = vsel %vm3269_vm9, %v1026_v48, %v1022_v41 }
  0xea   : > { %v664_v47 = vsub.f32 0.0, %v610_v9  ;;  %v609_v28 = vadd.f32 %v555_v29, %v455_v30  ;;  %2482 = vrcp.f32 %v3306_v36  ;;  %1824 = vperm.xlu2 %2362, %v1027_v49   ;;  %v1135_v22 = vmul.f32 %v3120_v56, %v3075_v54  ;;  %v560_v30 = vld [vmem:[%s2777_s26 + $0x118] sm:$0xff]  ;;  %v558_v49 = vld [vmem:[%s2777_s26 + $0x108] sm:$0xff] }
  0xeb   : > { %v1037_v2 = vsel %vm3302_vm12, %v3037_v33, %v1033_v45  ;;  %v751_v19 = vmul.f32 1.442695, %v665_v46  ;;  %vm1139_vm13 = vweird.f32 %v3075_v54  ;;  %vm1140_vm14 = vweird.f32 %v3120_v56  ;;  %v559_v45 = vld [vmem:[%s2777_s26 + $0x110] sm:$0xff]  ;;  %v467_v46 = vpop.xlane.xlu1 %466 }
  0xec   : > { %v1042_v58 = vsel %vm3277_vm10, %v1041_v44, %v1037_v2  ;;  %v749_v60 = vmul.f32 1.442695, %v664_v47  ;;  %v663_v63 = vsub.f32 0.0, %v609_v28  ;;  %v1136_v1 = vsub.f32 1.0, %v1135_v22  ;;  %vm3352_vm3 = vmor %vm1139_vm13, %vm1140_vm14  ;;  %v464_v47 = vpop.xlane.xlu0 %463 }
  0xed   : > { %1829 = vperm.xlu1 %2361, %v1042_v58   ;;  %2484 = vpow2.f32 %v751_v19  ;;  %v1143_v55 = vand.u32 2147483647, %v3075_v54  ;;  %v1145_v13 = vand.u32 2147483648, %v3075_v54  ;;  %v1060_v35 = vmul.f32 %v3016_v8, %v2968_v23 }
  0xee   : > { %v3326_v20 = vpop.eup %2478  ;;  %2486 = vpow2.f32 %v749_v60  ;;  %v747_v33 = vmul.f32 1.442695, %v663_v63  ;;  %v1137_v48 = vmul.f32 %v3120_v56, %v1136_v1  ;;  %vm1064_vm0 = vweird.f32 %v2968_v23 }
  0xef   : > { %vm3332_vm15 = vcmp.eq.f32.partialorder %v1143_v55, 8.507059e+37  ;;  %vm1065_vm1 = vweird.f32 %v3016_v8  ;;  %v3338_v59 = vpop.eup %2480  ;;  %v1146_v0 = vor.u32 1.1754944e-38, %v1145_v13  ;;  %v1061_v3 = vsub.f32 1.0, %v1060_v35 }
  0xf0   : > { %2488 = vpow2.f32 %v747_v33  ;;  %v1068_v51 = vand.u32 2147483647, %v2968_v23  ;;  %v3341_v31 = vpop.eup %2482  ;;  %v1138_v5 = vadd.f32 %v3120_v56, %v1137_v48  ;;  %v1070_v42 = vand.u32 2147483648, %v2968_v23  ;;  %vm1066_vm7 = vmor %vm1064_vm0, %vm1065_vm1 }
  0xf1   : > { %v1075_v11 = vmul.f32 %v3082_v14, %v3040_v34  ;;  %vm1079_vm2 = vweird.f32 %v3040_v34  ;;  %v1062_v4 = vmul.f32 %v3016_v8, %v1061_v3  ;;  %vm1080_vm5 = vweird.f32 %v3082_v14 }
  0xf2   : > { %vm3357_vm4 = vcmp.eq.f32.partialorder %v1068_v51, 8.507059e+37  ;;  %v1083_v29 = vand.u32 2147483647, %v3040_v34  ;;  %v1142_v54 = vsel %vm3352_vm3, %v3120_v56, %v1138_v5  ;;  %v1071_v44 = vor.u32 1.1754944e-38, %v1070_v42  ;;  %vm3392_vm8 = vmor %vm1079_vm2, %vm1080_vm5 }
  0xf3   : > { %v2485_v43 = vpop.eup %2484  ;;  %v1076_v9 = vsub.f32 1.0, %v1075_v11  ;;  %v1085_v41 = vand.u32 2147483648, %v3040_v34  ;;  %v1147_v19 = vsel %vm3332_vm15, %v1146_v0, %v1142_v54  ;;  %v1063_v22 = vadd.f32 %v3016_v8, %v1062_v4 }
  0xf4   : > { %v2487_v28 = vpop.eup %2486  ;;  %v3370_v2 = vadd.f32 1.0, %v2485_v43  ;;  %vm3375_vm6 = vcmp.eq.f32.partialorder %v1083_v29, 8.507059e+37  ;;  %1864 = vperm.xlu0 %2360, %v1147_v19   ;;  %v614_v1 = vadd.f32 %v560_v30, %v470_v32  ;;  %v613_v35 = vadd.f32 %v559_v45, %v467_v46  ;;  %v562_v19 = vld [vmem:[%s2777_s26 + $0x128] sm:$0xff] }
  0xf5   : > { %v3379_v56 = vadd.f32 1.0, %v2487_v28  ;;  %v1077_v60 = vmul.f32 %v3082_v14, %v1076_v9  ;;  %v1086_v63 = vor.u32 1.1754944e-38, %v1085_v41  ;;  %v1067_v33 = vsel %vm1066_vm7, %v3016_v8, %v1063_v22  ;;  %v479_v28 = vpop.xlane.xlu2 %478  ;;  %v476_v22 = vpop.xlane.xlu1 %475 }
  0xf6   : > { %v2489_v55 = vpop.eup %2488  ;;  %2490 = vrcp.f32 %v3370_v2  ;;  %v612_v23 = vadd.f32 %v558_v49, %v464_v47  ;;  %v1072_v17 = vsel %vm3357_vm4, %v1071_v44, %v1067_v33  ;;  %v668_v8 = vsub.f32 0.0, %v614_v1  ;;  %v563_v47 = vld [vmem:[%s2777_s26 + $0x130] sm:$0xff] }
  0xf7   : > { %2492 = vrcp.f32 %v3379_v56  ;;  %v3397_v48 = vadd.f32 1.0, %v2489_v55  ;;  %v1078_v0 = vadd.f32 %v3082_v14, %v1077_v60  ;;  %1839 = vperm.xlu2 %2362, %v1072_v17   ;;  %v667_v3 = vsub.f32 0.0, %v613_v35 }
  0xf8   : > { %v666_v51 = vsub.f32 0.0, %v612_v23  ;;  %v1180_v34 = vmul.f32 %v3165_v25, %v3123_v57  ;;  %vm1184_vm9 = vweird.f32 %v3123_v57  ;;  %vm1185_vm10 = vweird.f32 %v3165_v25 }
  0xf9   : > { %2494 = vrcp.f32 %v3397_v48  ;;  %v1082_v5 = vsel %vm3392_vm8, %v3082_v14, %v1078_v0  ;;  %v757_v11 = vmul.f32 1.442695, %v668_v8  ;;  %v755_v24 = vmul.f32 1.442695, %v667_v3  ;;  %vm1186_vm1 = vmor %vm1184_vm9, %vm1185_vm10  ;;  %v561_v8 = vld [vmem:[%s2777_s26 + $0x120] sm:$0xff]  ;;  %v473_v3 = vpop.xlane.xlu0 %472 }
  0xfa   : > { %v1087_v42 = vsel %vm3375_vm6, %v1086_v63, %v1082_v5  ;;  %v753_v4 = vmul.f32 1.442695, %v666_v51  ;;  %v1181_v26 = vsub.f32 1.0, %v1180_v34  ;;  %v1188_v29 = vand.u32 2147483647, %v3123_v57 }
  0xfb   : > { %1844 = vperm.xlu1 %2361, %v1087_v42   ;;  %v1190_v30 = vand.u32 2147483648, %v3123_v57  ;;  %v1105_v14 = vmul.f32 %v3053_v53, %v3018_v10  ;;  %2496 = vpow2.f32 %v757_v11  ;;  %vm1109_vm11 = vweird.f32 %v3018_v10 }
  0xfc   : > { %v3416_v32 = vpop.eup %2490  ;;  %vm1110_vm12 = vweird.f32 %v3053_v53  ;;  %v1113_v43 = vand.u32 2147483647, %v3018_v10  ;;  %2498 = vpow2.f32 %v755_v24  ;;  %v1182_v44 = vmul.f32 %v3165_v25, %v1181_v26 }
  0xfd   : > { %v3421_v54 = vpop.eup %2492  ;;  %vm3424_vm13 = vcmp.eq.f32.partialorder %v1188_v29, 8.507059e+37  ;;  %v1191_v41 = vor.u32 1.1754944e-38, %v1190_v30  ;;  %2500 = vpow2.f32 %v753_v4  ;;  %v1106_v45 = vsub.f32 1.0, %v1105_v14  ;;  %vm1111_vm3 = vmor %vm1109_vm11, %vm1110_vm12 }
  0xfe   : > { %vm3428_vm14 = vcmp.eq.f32.partialorder %v1113_v43, 8.507059e+37  ;;  %v1115_v49 = vand.u32 2147483648, %v3018_v10  ;;  %v1183_v60 = vadd.f32 %v3165_v25, %v1182_v44  ;;  %v1120_v63 = vmul.f32 %v3138_v6, %v3085_v16 }
  0xff   : > { %v3435_v58 = vpop.eup %2494  ;;  %vm1124_vm15 = vweird.f32 %v3085_v16  ;;  %vm1125_vm0 = vweird.f32 %v3138_v6  ;;  %v1107_v1 = vmul.f32 %v3053_v53, %v1106_v45  ;;  %v1128_v33 = vand.u32 2147483647, %v3085_v16 }
 0x100   : > { %v1116_v55 = vor.u32 1.1754944e-38, %v1115_v49  ;;  %v1130_v13 = vand.u32 2147483648, %v3085_v16  ;;  %v1187_v35 = vsel %vm1186_vm1, %v3165_v25, %v1183_v60  ;;  %v1121_v23 = vsub.f32 1.0, %v1120_v63  ;;  %vm3472_vm4 = vmor %vm1124_vm15, %vm1125_vm0 }
 0x101   : > { %v617_v17 = vadd.f32 %v563_v47, %v479_v28  ;;  %v616_v0 = vadd.f32 %v562_v19, %v476_v22  ;;  %v2497_v51 = vpop.eup %2496  ;;  %v1192_v34 = vsel %vm3424_vm13, %v1191_v41, %v1187_v35  ;;  %v1108_v57 = vadd.f32 %v3053_v53, %v1107_v1  ;;  %v488_v1 = vpop.xlane.xlu2 %487 }
 0x102   : > { %vm3454_vm2 = vcmp.eq.f32.partialorder %v1128_v33, 8.507059e+37  ;;  %v1131_v42 = vor.u32 1.1754944e-38, %v1130_v13  ;;  %v2499_v11 = vpop.eup %2498  ;;  %v3458_v24 = vadd.f32 1.0, %v2497_v51  ;;  %1879 = vperm.xlu0 %2360, %v1192_v34   ;;  %v1122_v25 = vmul.f32 %v3138_v6, %v1121_v23  ;;  %v566_v51 = vld [vmem:[%s2777_s26 + $0x148] sm:$0xff] }
 0x103   : > { %v671_v4 = vsub.f32 0.0, %v617_v17  ;;  %v670_v26 = vsub.f32 0.0, %v616_v0  ;;  %v2501_v29 = vpop.eup %2500  ;;  %v3465_v30 = vadd.f32 1.0, %v2499_v11  ;;  %v1112_v14 = vsel %vm1111_vm3, %v3053_v53, %v1108_v57  ;;  %v485_v11 = vpop.xlane.xlu1 %484 }
 0x104   : > { %v615_v44 = vadd.f32 %v561_v8, %v473_v3  ;;  %v1225_v10 = vmul.f32 %v3251_v61, %v3210_v50  ;;  %2502 = vrcp.f32 %v3458_v24  ;;  %v3479_v9 = vadd.f32 1.0, %v2501_v29 }
 0x105   : > { %v1117_v41 = vsel %vm3428_vm14, %v1116_v55, %v1112_v14  ;;  %v1123_v53 = vadd.f32 %v3138_v6, %v1122_v25  ;;  %2504 = vrcp.f32 %v3465_v30  ;;  %v763_v16 = vmul.f32 1.442695, %v671_v4 }
 0x106   : > { %1854 = vperm.xlu2 %2362, %v1117_v41   ;;  %v761_v45 = vmul.f32 1.442695, %v670_v26  ;;  %v669_v49 = vsub.f32 0.0, %v615_v44  ;;  %2506 = vrcp.f32 %v3479_v9  ;;  %v1226_v28 = vsub.f32 1.0, %v1225_v10 }
 0x107   : > { %v1127_v47 = vsel %vm3472_vm4, %v3138_v6, %v1123_v53  ;;  %vm1229_vm5 = vweird.f32 %v3210_v50  ;;  %2508 = vpow2.f32 %v763_v16  ;;  %vm1230_vm6 = vweird.f32 %v3251_v61 }
 0x108   : > { %v1132_v46 = vsel %vm3454_vm2, %v1131_v42, %v1127_v47  ;;  %v759_v19 = vmul.f32 1.442695, %v669_v49  ;;  %2510 = vpow2.f32 %v761_v45  ;;  %v1227_v22 = vmul.f32 %v3251_v61, %v1226_v28  ;;  %vm1231_vm10 = vmor %vm1229_vm5, %vm1230_vm6  ;;  %v565_v42 = vld [vmem:[%s2777_s26 + $0x140] sm:$0xff] }
 0x109   : > { %1859 = vperm.xlu1 %2361, %v1132_v46   ;;  %v1233_v60 = vand.u32 2147483647, %v3210_v50  ;;  %v1235_v63 = vand.u32 2147483648, %v3210_v50  ;;  %v1150_v6 = vmul.f32 %v3106_v38, %v3055_v27  ;;  %vm1154_vm7 = vweird.f32 %v3055_v27  ;;  %v564_v46 = vld [vmem:[%s2777_s26 + $0x138] sm:$0xff] }
 0x10a   : > { %2512 = vpow2.f32 %v759_v19  ;;  %vm1155_vm8 = vweird.f32 %v3106_v38  ;;  %v3500_v55 = vpop.eup %2502  ;;  %v1228_v33 = vadd.f32 %v3251_v61, %v1227_v22  ;;  %v1158_v23 = vand.u32 2147483647, %v3055_v27  ;;  %v482_v19 = vpop.xlane.xlu0 %481 }
 0x10b   : > { %vm3503_vm9 = vcmp.eq.f32.partialorder %v1233_v60, 8.507059e+37  ;;  %v1236_v35 = vor.u32 1.1754944e-38, %v1235_v63  ;;  %v3508_v17 = vpop.eup %2504  ;;  %v1151_v0 = vsub.f32 1.0, %v1150_v6  ;;  %v1160_v8 = vand.u32 2147483648, %v3055_v27  ;;  %vm3546_vm15 = vmor %vm1154_vm7, %vm1155_vm8 }
 0x10c   : > { %v1165_v3 = vmul.f32 %v3189_v52, %v3141_v7  ;;  %vm1169_vm11 = vweird.f32 %v3141_v7  ;;  %v3519_v34 = vpop.eup %2506  ;;  %v1232_v57 = vsel %vm1231_vm10, %v3251_v61, %v1228_v33  ;;  %vm3522_vm12 = vcmp.eq.f32.partialorder %v1158_v23, 8.507059e+37 }
 0x10d   : > { %vm1170_vm13 = vweird.f32 %v3189_v52  ;;  %v1173_v50 = vand.u32 2147483647, %v3141_v7  ;;  %v2509_v25 = vpop.eup %2508  ;;  %v1237_v4 = vsel %vm3503_vm9, %v1236_v35, %v1232_v57  ;;  %v1152_v26 = vmul.f32 %v3106_v38, %v1151_v0 }
 0x10e   : > { %v1161_v29 = vor.u32 1.1754944e-38, %v1160_v8  ;;  %v1166_v14 = vsub.f32 1.0, %v1165_v3  ;;  %v2511_v61 = vpop.eup %2510  ;;  %v3532_v43 = vadd.f32 1.0, %v2509_v25  ;;  %1894 = vperm.xlu0 %2360, %v1237_v4   ;;  %v1175_v10 = vand.u32 2147483648, %v3141_v7  ;;  %vm3559_vm0 = vmor %vm1169_vm11, %vm1170_vm13 }
 0x10f   : > { %vm3534_vm14 = vcmp.eq.f32.partialorder %v1173_v50, 8.507059e+37  ;;  %v620_v41 = vadd.f32 %v566_v51, %v488_v1  ;;  %v3539_v16 = vadd.f32 1.0, %v2511_v61  ;;  %v1153_v45 = vadd.f32 %v3106_v38, %v1152_v26 }
 0x110   : > { %v2513_v53 = vpop.eup %2512  ;;  %v1167_v47 = vmul.f32 %v3189_v52, %v1166_v14  ;;  %v619_v28 = vadd.f32 %v565_v42, %v485_v11  ;;  %2514 = vrcp.f32 %v3532_v43  ;;  %v1176_v27 = vor.u32 1.1754944e-38, %v1175_v10 }
 0x111   : > { %v3553_v22 = vadd.f32 1.0, %v2513_v53  ;;  %v674_v63 = vsub.f32 0.0, %v620_v41  ;;  %2516 = vrcp.f32 %v3539_v16  ;;  %v1157_v6 = vsel %vm3546_vm15, %v3106_v38, %v1153_v45  ;;  %v497_v38 = vpop.xlane.xlu2 %496  ;;  %v569_v53 = vld [vmem:[%s2777_s26 + $0x160] sm:$0xff] }
 0x112   : > { %v1168_v1 = vadd.f32 %v3189_v52, %v1167_v47  ;;  %v673_v33 = vsub.f32 0.0, %v619_v28  ;;  %v1162_v7 = vsel %vm3522_vm12, %v1161_v29, %v1157_v6  ;;  %v618_v35 = vadd.f32 %v564_v46, %v482_v19 }
 0x113   : > { %2518 = vrcp.f32 %v3553_v22  ;;  %v769_v13 = vmul.f32 1.442695, %v674_v63  ;;  %1869 = vperm.xlu2 %2362, %v1162_v7   ;;  %v1270_v8 = vmul.f32 %v3338_v59, %v3296_v37  ;;  %vm1274_vm1 = vweird.f32 %v3296_v37  ;;  %v568_v7 = vld [vmem:[%s2777_s26 + $0x158] sm:$0xff] }
 0x114   : > { %v1172_v23 = vsel %vm3559_vm0, %v3189_v52, %v1168_v1  ;;  %v767_v0 = vmul.f32 1.442695, %v673_v33  ;;  %v672_v51 = vsub.f32 0.0, %v618_v35  ;;  %vm1275_vm2 = vweird.f32 %v3338_v59 }
 0x115   : > { %v1177_v3 = vsel %vm3534_vm14, %v1176_v27, %v1172_v23  ;;  %2520 = vpow2.f32 %v769_v13  ;;  %v1271_v57 = vsub.f32 1.0, %v1270_v8  ;;  %v1278_v5 = vand.u32 2147483647, %v3296_v37  ;;  %vm1276_vm9 = vmor %vm1274_vm1, %vm1275_vm2  ;;  %v494_v13 = vpop.xlane.xlu1 %493  ;;  %v567_v8 = vld [vmem:[%s2777_s26 + $0x150] sm:$0xff] }
 0x116   : > { %1874 = vperm.xlu1 %2361, %v1177_v3   ;;  %2522 = vpow2.f32 %v767_v0  ;;  %v1280_v52 = vand.u32 2147483648, %v3296_v37  ;;  %v3582_v50 = vpop.eup %2514  ;;  %v765_v42 = vmul.f32 1.442695, %v672_v51  ;;  %v1195_v11 = vmul.f32 %v3156_v18, %v3108_v40 }
 0x117   : > { %vm1199_vm3 = vweird.f32 %v3108_v40  ;;  %vm1200_vm4 = vweird.f32 %v3156_v18  ;;  %v3588_v25 = vpop.eup %2516  ;;  %v1272_v4 = vmul.f32 %v3338_v59, %v1271_v57  ;;  %vm3591_vm5 = vcmp.eq.f32.partialorder %v1278_v5, 8.507059e+37 }
 0x118   : > { %v1281_v29 = vor.u32 1.1754944e-38, %v1280_v52  ;;  %v1203_v14 = vand.u32 2147483647, %v3108_v40  ;;  %2524 = vpow2.f32 %v765_v42  ;;  %v1196_v44 = vsub.f32 1.0, %v1195_v11  ;;  %vm3629_vm10 = vmor %vm1199_vm3, %vm1200_vm4 }
 0x119   : > { %v3596_v61 = vpop.eup %2518  ;;  %v1205_v10 = vand.u32 2147483648, %v3108_v40  ;;  %v1210_v41 = vmul.f32 %v3257_v15, %v3222_v21  ;;  %v1273_v45 = vadd.f32 %v3338_v59, %v1272_v4  ;;  %vm1214_vm7 = vweird.f32 %v3222_v21  ;;  %v3648_v5 = vpop.xlane.xlu2 %505  ;;  %v572_v40 = vld [vmem:[%s2777_s26 + $0x178] sm:$0xff] }
 0x11a   : > { %vm3603_vm6 = vcmp.eq.f32.partialorder %v1203_v14, 8.507059e+37  ;;  %vm1215_vm8 = vweird.f32 %v3257_v15  ;;  %v1197_v28 = vmul.f32 %v3156_v18, %v1196_v44  ;;  %v1218_v60 = vand.u32 2147483647, %v3222_v21 }
 0x11b   : > { %v2521_v47 = vpop.eup %2520  ;;  %v1206_v46 = vor.u32 1.1754944e-38, %v1205_v10  ;;  %v1211_v19 = vsub.f32 1.0, %v1210_v41  ;;  %v1277_v6 = vsel %vm1276_vm9, %v3338_v59, %v1273_v45  ;;  %v1220_v1 = vand.u32 2147483648, %v3222_v21  ;;  %vm3640_vm11 = vmor %vm1214_vm7, %vm1215_vm8 }
 0x11c   : > { %v2523_v27 = vpop.eup %2522  ;;  %v3615_v63 = vadd.f32 1.0, %v2521_v47  ;;  %v623_v33 = vadd.f32 %v569_v53, %v497_v38  ;;  %v1282_v37 = vsel %vm3591_vm5, %v1281_v29, %v1277_v6  ;;  %v1198_v23 = vadd.f32 %v3156_v18, %v1197_v28  ;;  %v491_v38 = vpop.xlane.xlu0 %490 }
 0x11d   : > { %v3620_v35 = vadd.f32 1.0, %v2523_v27  ;;  %v1212_v59 = vmul.f32 %v3257_v15, %v1211_v19  ;;  %1909 = vperm.xlu0 %2360, %v1282_v37   ;;  %vm3644_vm12 = vcmp.eq.f32.partialorder %v1218_v60, 8.507059e+37  ;;  %v1221_v51 = vor.u32 1.1754944e-38, %v1220_v1 }
 0x11e   : > { %2526 = vrcp.f32 %v3615_v63  ;;  %v677_v57 = vsub.f32 0.0, %v623_v33  ;;  %v2525_v52 = vpop.eup %2524  ;;  %v1202_v42 = vsel %vm3629_vm10, %v3156_v18, %v1198_v23  ;;  %v622_v11 = vadd.f32 %v568_v7, %v494_v13 }
 0x11f   : > { %2528 = vrcp.f32 %v3620_v35  ;;  %v1213_v21 = vadd.f32 %v3257_v15, %v1212_v59  ;;  %v3655_v4 = vadd.f32 1.0, %v2525_v52  ;;  %v1207_v26 = vsel %vm3603_vm6, %v1206_v46, %v1202_v42 }
 0x120   : > { %v775_v29 = vmul.f32 1.442695, %v677_v57  ;;  %v621_v14 = vadd.f32 %v567_v8, %v491_v38  ;;  %1884 = vperm.xlu2 %2362, %v1207_v26   ;;  %v676_v10 = vsub.f32 0.0, %v622_v11  ;;  %v1315_v41 = vmul.f32 %v3421_v54, %v3379_v56  ;;  %v503_v57 = vpop.xlane.xlu1 %502 }
 0x121   : > { %v1217_v44 = vsel %vm3640_vm11, %v3257_v15, %v1213_v21  ;;  %vm1319_vm13 = vweird.f32 %v3379_v56  ;;  %2530 = vrcp.f32 %v3655_v4  ;;  %vm1320_vm14 = vweird.f32 %v3421_v54  ;;  %v3709_v52 = vpop.xlane.xlu2 %514 }
 0x122   : > { %v1222_v18 = vsel %vm3644_vm12, %v1221_v51, %v1217_v44  ;;  %v675_v53 = vsub.f32 0.0, %v621_v14  ;;  %2532 = vpow2.f32 %v775_v29  ;;  %v773_v45 = vmul.f32 1.442695, %v676_v10  ;;  %vm3696_vm3 = vmor %vm1319_vm13, %vm1320_vm14  ;;  %v571_v51 = vld [vmem:[%s2777_s26 + $0x170] sm:$0xff]  ;;  %v570_v29 = vld [vmem:[%s2777_s26 + $0x168] sm:$0xff] }
 0x123   : > { %1889 = vperm.xlu1 %2361, %v1222_v18   ;;  %v1316_v49 = vsub.f32 1.0, %v1315_v41  ;;  %v1323_v15 = vand.u32 2147483647, %v3379_v56  ;;  %v1325_v46 = vand.u32 2147483648, %v3379_v56  ;;  %v1240_v19 = vmul.f32 %v3244_v39, %v3203_v12 }
 0x124   : > { %v3670_v47 = vpop.eup %2526  ;;  %v771_v28 = vmul.f32 1.442695, %v675_v53  ;;  %vm1244_vm15 = vweird.f32 %v3203_v12  ;;  %2534 = vpow2.f32 %v773_v45  ;;  %vm1245_vm1 = vweird.f32 %v3244_v39  ;;  %v500_v14 = vpop.xlane.xlu0 %499 }
 0x125   : > { %v3676_v60 = vpop.eup %2528  ;;  %v1317_v27 = vmul.f32 %v3421_v54, %v1316_v49  ;;  %vm3679_vm0 = vcmp.eq.f32.partialorder %v1323_v15, 8.507059e+37  ;;  %v1326_v1 = vor.u32 1.1754944e-38, %v1325_v46  ;;  %v1241_v33 = vsub.f32 1.0, %v1240_v19  ;;  %vm1246_vm7 = vmor %vm1244_vm15, %vm1245_vm1 }
 0x126   : > { %2536 = vpow2.f32 %v771_v28  ;;  %v1248_v7 = vand.u32 2147483647, %v3203_v12  ;;  %v1250_v37 = vand.u32 2147483648, %v3203_v12  ;;  %v1255_v23 = vmul.f32 %v3341_v31, %v3306_v36 }
 0x127   : > { %v1318_v13 = vadd.f32 %v3421_v54, %v1317_v27  ;;  %vm1259_vm2 = vweird.f32 %v3306_v36  ;;  %v3690_v0 = vpop.eup %2530  ;;  %v1242_v8 = vmul.f32 %v3244_v39, %v1241_v33  ;;  %vm1260_vm5 = vweird.f32 %v3341_v31 }
 0x128   : > { %vm3701_vm4 = vcmp.eq.f32.partialorder %v1248_v7, 8.507059e+37  ;;  %v1263_v3 = vand.u32 2147483647, %v3306_v36  ;;  %v2533_v56 = vpop.eup %2532  ;;  %v1251_v21 = vor.u32 1.1754944e-38, %v1250_v37  ;;  %v1256_v11 = vsub.f32 1.0, %v1255_v23  ;;  %vm1261_vm8 = vmor %vm1259_vm2, %vm1260_vm5 }
 0x129   : > { %v1322_v42 = vsel %vm3696_vm3, %v3421_v54, %v1318_v13  ;;  %v1265_v26 = vand.u32 2147483648, %v3306_v36  ;;  %v3716_v44 = vadd.f32 1.0, %v2533_v56  ;;  %v1243_v41 = vadd.f32 %v3244_v39, %v1242_v8 }
 0x12a   : > { %v1327_v10 = vsel %vm3679_vm0, %v1326_v1, %v1322_v42  ;;  %vm3721_vm6 = vcmp.eq.f32.partialorder %v1263_v3, 8.507059e+37  ;;  %v2535_v53 = vpop.eup %2534  ;;  %v1257_v54 = vmul.f32 %v3341_v31, %v1256_v11  ;;  %v626_v49 = vadd.f32 %v572_v40, %v3648_v5 }
 0x12b   : > { %1924 = vperm.xlu0 %2360, %v1327_v10   ;;  %v1266_v45 = vor.u32 1.1754944e-38, %v1265_v26  ;;  %v625_v15 = vadd.f32 %v571_v51, %v503_v57  ;;  %2538 = vrcp.f32 %v3716_v44  ;;  %v3732_v46 = vadd.f32 1.0, %v2535_v53  ;;  %v3760_v57 = vpop.xlane.xlu2 %523 }
 0x12c   : > { %v2537_v28 = vpop.eup %2536  ;;  %v1247_v19 = vsel %vm1246_vm7, %v3244_v39, %v1243_v41  ;;  %v624_v12 = vadd.f32 %v570_v29, %v500_v14  ;;  %v1258_v5 = vadd.f32 %v3341_v31, %v1257_v54  ;;  %v680_v1 = vsub.f32 0.0, %v626_v49  ;;  %v575_v54 = vld [vmem:[%s2777_s26 + $0x190] sm:$0xff]  ;;  %v512_v49 = vpop.xlane.xlu1 %511 }
 0x12d   : > { %v3739_v27 = vadd.f32 1.0, %v2537_v28  ;;  %v1252_v6 = vsel %vm3701_vm4, %v1251_v21, %v1247_v19  ;;  %2540 = vrcp.f32 %v3732_v46  ;;  %v679_v33 = vsub.f32 0.0, %v625_v15  ;;  %v573_v19 = vld [vmem:[%s2777_s26 + $0x180] sm:$0xff] }
 0x12e   : > { %1899 = vperm.xlu2 %2362, %v1252_v6   ;;  %v678_v7 = vsub.f32 0.0, %v624_v12  ;;  %v1360_v39 = vmul.f32 %v3508_v17, %v3465_v30  ;;  %v1262_v36 = vsel %vm1261_vm8, %v3341_v31, %v1258_v5  ;;  %v781_v13 = vmul.f32 1.442695, %v680_v1  ;;  %v509_v12 = vpop.xlane.xlu0 %508 }
 0x12f   : > { %2542 = vrcp.f32 %v3739_v27  ;;  %v1267_v37 = vsel %vm3721_vm6, %v1266_v45, %v1262_v36  ;;  %v779_v23 = vmul.f32 1.442695, %v679_v33  ;;  %vm1364_vm9 = vweird.f32 %v3465_v30  ;;  %v574_v45 = vld [vmem:[%s2777_s26 + $0x188] sm:$0xff] }
 0x130   : > { %v777_v59 = vmul.f32 1.442695, %v678_v7  ;;  %v1361_v8 = vsub.f32 1.0, %v1360_v39  ;;  %1904 = vperm.xlu1 %2361, %v1267_v37   ;;  %2544 = vpow2.f32 %v781_v13  ;;  %v1368_v38 = vand.u32 2147483647, %v3465_v30 }
 0x131   : > { %v1370_v3 = vand.u32 2147483648, %v3465_v30  ;;  %v3754_v40 = vpop.eup %2538  ;;  %2546 = vpow2.f32 %v779_v23  ;;  %vm1365_vm10 = vweird.f32 %v3508_v17  ;;  %v1285_v51 = vmul.f32 %v3326_v20, %v3274_v62 }
 0x132   : > { %v1362_v31 = vmul.f32 %v3508_v17, %v1361_v8  ;;  %2548 = vpow2.f32 %v777_v59  ;;  %vm3762_vm11 = vcmp.eq.f32.partialorder %v1368_v38, 8.507059e+37  ;;  %vm1289_vm12 = vweird.f32 %v3274_v62  ;;  %vm3776_vm13 = vmor %vm1364_vm9, %vm1365_vm10  ;;  %v578_v38 = vld [vmem:[%s2777_s26 + $0x1a8] sm:$0xff] }
 0x133   : > { %v1371_v42 = vor.u32 1.1754944e-38, %v1370_v3  ;;  %v3767_v21 = vpop.eup %2540  ;;  %v1286_v26 = vsub.f32 1.0, %v1285_v51  ;;  %v1293_v29 = vand.u32 2147483647, %v3274_v62  ;;  %v1295_v14 = vand.u32 2147483648, %v3274_v62 }
 0x134   : > { %v1363_v11 = vadd.f32 %v3508_v17, %v1362_v31  ;;  %vm1290_vm14 = vweird.f32 %v3326_v20  ;;  %v1300_v18 = vmul.f32 %v3435_v58, %v3397_v48  ;;  %vm1304_vm15 = vweird.f32 %v3397_v48 }
 0x135   : > { %v3772_v10 = vpop.eup %2542  ;;  %v1308_v53 = vand.u32 2147483647, %v3397_v48  ;;  %v1287_v15 = vmul.f32 %v3326_v20, %v1286_v26  ;;  %vm3791_vm0 = vcmp.eq.f32.partialorder %v1293_v29, 8.507059e+37  ;;  %vm1305_vm1 = vweird.f32 %v3435_v58  ;;  %vm1291_vm2 = vmor %vm1289_vm12, %vm1290_vm14 }
 0x136   : > { %v1367_v30 = vsel %vm3776_vm13, %v3508_v17, %v1363_v11  ;;  %v2545_v6 = vpop.eup %2544  ;;  %v1296_v1 = vor.u32 1.1754944e-38, %v1295_v14  ;;  %v1301_v33 = vsub.f32 1.0, %v1300_v18  ;;  %v1310_v7 = vand.u32 2147483648, %v3397_v48  ;;  %vm3822_vm4 = vmor %vm1304_vm15, %vm1305_vm1  ;;  %v3833_v14 = vpop.permute.xlu2 %1779 }
 0x137   : > { %v1372_v5 = vsel %vm3762_vm11, %v1371_v42, %v1367_v30  ;;  %v2547_v39 = vpop.eup %2546  ;;  %v3800_v17 = vadd.f32 1.0, %v2545_v6  ;;  %v1288_v36 = vadd.f32 %v3326_v20, %v1287_v15  ;;  %v629_v13 = vadd.f32 %v575_v54, %v3709_v52 }
 0x138   : > { %1939 = vperm.xlu0 %2360, %v1372_v5   ;;  %v628_v37 = vadd.f32 %v574_v45, %v512_v49  ;;  %v2549_v23 = vpop.eup %2548  ;;  %v3804_v59 = vadd.f32 1.0, %v2547_v39  ;;  %v1302_v8 = vmul.f32 %v3435_v58, %v1301_v33  ;;  %vm3811_vm3 = vcmp.eq.f32.partialorder %v1308_v53, 8.507059e+37 }
 0x139   : > { %v627_v3 = vadd.f32 %v573_v19, %v509_v12  ;;  %v3815_v31 = vadd.f32 1.0, %v2549_v23  ;;  %v1292_v52 = vsel %vm1291_vm2, %v3326_v20, %v1288_v36  ;;  %v1311_v62 = vor.u32 1.1754944e-38, %v1310_v7 }
 0x13a   : > { %v683_v56 = vsub.f32 0.0, %v629_v13  ;;  %2550 = vrcp.f32 %v3800_v17  ;;  %v1297_v42 = vsel %vm3791_vm0, %v1296_v1, %v1292_v52  ;;  %v1303_v11 = vadd.f32 %v3435_v58, %v1302_v8 }
 0x13b   : > { %v682_v26 = vsub.f32 0.0, %v628_v37  ;;  %2552 = vrcp.f32 %v3804_v59  ;;  %1914 = vperm.xlu2 %2362, %v1297_v42   ;;  %v681_v29 = vsub.f32 0.0, %v627_v3  ;;  %v1405_v48 = vmul.f32 %v3588_v25, %v3539_v16  ;;  %v518_v3 = vpop.xlane.xlu0 %517  ;;  %v521_v42 = vpop.xlane.xlu1 %520 }
 0x13c   : > { %v787_v20 = vmul.f32 1.442695, %v683_v56  ;;  %2554 = vrcp.f32 %v3815_v31  ;;  %v1307_v41 = vsel %vm3822_vm4, %v3435_v58, %v1303_v11  ;;  %vm1409_vm5 = vweird.f32 %v3539_v16  ;;  %v577_v56 = vld [vmem:[%s2777_s26 + $0x1a0] sm:$0xff] }
 0x13d   : > { %v785_v18 = vmul.f32 1.442695, %v682_v26  ;;  %v1312_v53 = vsel %vm3811_vm3, %v1311_v62, %v1307_v41  ;;  %v783_v54 = vmul.f32 1.442695, %v681_v29  ;;  %v1406_v45 = vsub.f32 1.0, %v1405_v48 }
 0x13e   : > { %2556 = vpow2.f32 %v787_v20  ;;  %1919 = vperm.xlu1 %2361, %v1312_v53   ;;  %v1413_v49 = vand.u32 2147483647, %v3539_v16  ;;  %v1415_v30 = vand.u32 2147483648, %v3539_v16  ;;  %v1330_v15 = vmul.f32 %v3416_v32, %v3370_v2  ;;  %v1663_v53 = vld [vmem:[%s3943_s30 + $0x20] sm:$0xff] }
 0x13f   : > { %2558 = vpow2.f32 %v785_v18  ;;  %v1407_v58 = vmul.f32 %v3588_v25, %v1406_v45  ;;  %vm1410_vm6 = vweird.f32 %v3588_v25  ;;  %vm1334_vm7 = vweird.f32 %v3370_v2  ;;  %v576_v45 = vld [vmem:[%s2777_s26 + $0x198] sm:$0xff] }
 0x140   : > { %2560 = vpow2.f32 %v783_v54  ;;  %v3849_v28 = vpop.eup %2550  ;;  %vm3851_vm8 = vcmp.eq.f32.partialorder %v1413_v49, 8.507059e+37  ;;  %v1331_v12 = vsub.f32 1.0, %v1330_v15  ;;  %vm1335_vm9 = vweird.f32 %v3416_v32  ;;  %vm3867_vm10 = vmor %vm1409_vm5, %vm1410_vm6  ;;  %v3903_v49 = vpop.permute.xlu2 %1784 }
 0x141   : > { %v1338_v6 = vand.u32 2147483647, %v3370_v2  ;;  %v3857_v5 = vpop.eup %2552  ;;  %v1408_v1 = vadd.f32 %v3588_v25, %v1407_v58  ;;  %v1416_v33 = vor.u32 1.1754944e-38, %v1415_v30  ;;  %v1340_v7 = vand.u32 2147483648, %v3370_v2  ;;  %vm1336_vm14 = vmor %vm1334_vm7, %vm1335_vm9 }
 0x142   : > { %v1345_v39 = vmul.f32 %v3519_v34, %v3479_v9  ;;  %v3863_v36 = vpop.eup %2554  ;;  %v1332_v37 = vmul.f32 %v3416_v32, %v1331_v12  ;;  %vm1349_vm12 = vweird.f32 %v3479_v9  ;;  %v1353_v8 = vand.u32 2147483647, %v3479_v9 }
 0x143   : > { %vm3872_vm11 = vcmp.eq.f32.partialorder %v1338_v6, 8.507059e+37  ;;  %v1412_v16 = vsel %vm3867_vm10, %v3588_v25, %v1408_v1  ;;  %vm1350_vm13 = vweird.f32 %v3519_v34  ;;  %v1355_v62 = vand.u32 2147483648, %v3479_v9 }
 0x144   : > { %v2557_v52 = vpop.eup %2556  ;;  %v1346_v51 = vsub.f32 1.0, %v1345_v39  ;;  %v1417_v20 = vsel %vm3851_vm8, %v1416_v33, %v1412_v16  ;;  %v1333_v29 = vadd.f32 %v3416_v32, %v1332_v37  ;;  %v1341_v48 = vor.u32 1.1754944e-38, %v1340_v7  ;;  %vm3912_vm0 = vmor %vm1349_vm12, %vm1350_vm13 }
 0x145   : > { %v2559_v11 = vpop.eup %2558  ;;  %v3885_v26 = vadd.f32 1.0, %v2557_v52  ;;  %1954 = vperm.xlu0 %2360, %v1417_v20   ;;  %vm3897_vm15 = vcmp.eq.f32.partialorder %v1353_v8, 8.507059e+37  ;;  %v632_v54 = vadd.f32 %v578_v38, %v3760_v57  ;;  %v1356_v58 = vor.u32 1.1754944e-38, %v1355_v62  ;;  %v3930_v8 = vpop.permute.xlu0 %1769 }
 0x146   : > { %v2561_v41 = vpop.eup %2560  ;;  %v3890_v18 = vadd.f32 1.0, %v2559_v11  ;;  %v1347_v25 = vmul.f32 %v3519_v34, %v1346_v51  ;;  %v1337_v15 = vsel %vm1336_vm14, %v3416_v32, %v1333_v29  ;;  %v631_v19 = vadd.f32 %v577_v56, %v521_v42 }
 0x147   : > { %v3905_v30 = vadd.f32 1.0, %v2561_v41  ;;  %2562 = vrcp.f32 %v3885_v26  ;;  %v1342_v57 = vsel %vm3872_vm11, %v1341_v48, %v1337_v15  ;;  %v686_v6 = vsub.f32 0.0, %v632_v54 }
 0x148   : > { %v1348_v12 = vadd.f32 %v3519_v34, %v1347_v25  ;;  %2564 = vrcp.f32 %v3890_v18  ;;  %1929 = vperm.xlu2 %2362, %v1342_v57   ;;  %v685_v32 = vsub.f32 0.0, %v631_v19  ;;  %v630_v1 = vadd.f32 %v576_v45, %v518_v3  ;;  %v3965_v54 = vpop.permute.xlu2 %1794  ;;  %v3967_v45 = vpop.permute.xlu1 %1774 }
 0x149   : > { %v1450_v9 = vmul.f32 %v3676_v60, %v3620_v35  ;;  %2566 = vrcp.f32 %v3905_v30  ;;  %v793_v7 = vmul.f32 1.442695, %v686_v6  ;;  %v1458_v38 = vand.u32 2147483647, %v3620_v35 }
 0x14a   : > { %v1352_v33 = vsel %vm3912_vm0, %v3519_v34, %v1348_v12  ;;  %v791_v13 = vmul.f32 1.442695, %v685_v32  ;;  %v684_v37 = vsub.f32 0.0, %v630_v1  ;;  %v1460_v3 = vand.u32 2147483648, %v3620_v35 }
 0x14b   : > { %v1357_v39 = vsel %vm3897_vm15, %v1356_v58, %v1352_v33  ;;  %v1451_v23 = vsub.f32 1.0, %v1450_v9  ;;  %2568 = vpow2.f32 %v793_v7  ;;  %v1375_v52 = vmul.f32 %v3500_v55, %v3458_v24 }
 0x14c   : > { %1934 = vperm.xlu1 %2361, %v1357_v39   ;;  %2570 = vpow2.f32 %v791_v13  ;;  %v789_v34 = vmul.f32 1.442695, %v684_v37  ;;  %vm1455_vm1 = vweird.f32 %v3676_v60  ;;  %vm1454_vm2 = vweird.f32 %v3620_v35 }
 0x14d   : > { %v1452_v16 = vmul.f32 %v3676_v60, %v1451_v23  ;;  %v3945_v51 = vpop.eup %2562  ;;  %vm3948_vm3 = vcmp.eq.f32.partialorder %v1458_v38, 8.507059e+37  ;;  %v1376_v56 = vsub.f32 1.0, %v1375_v52  ;;  %vm1379_vm4 = vweird.f32 %v3458_v24  ;;  %vm1456_vm5 = vmor %vm1454_vm2, %vm1455_vm1  ;;  %v4008_v52 = vpop.permute.xlu0 %1804 }
 0x14e   : > { %v3953_v42 = vpop.eup %2564  ;;  %2572 = vpow2.f32 %v789_v34  ;;  %v1383_v20 = vand.u32 2147483647, %v3458_v24  ;;  %v1385_v29 = vand.u32 2147483648, %v3458_v24  ;;  %v1461_v35 = vor.u32 1.1754944e-38, %v1460_v3 }
 0x14f   : > { %v1453_v11 = vadd.f32 %v3676_v60, %v1452_v16  ;;  %v3958_v48 = vpop.eup %2566  ;;  %v1377_v41 = vmul.f32 %v3500_v55, %v1376_v56  ;;  %vm1380_vm6 = vweird.f32 %v3500_v55  ;;  %v1390_v25 = vmul.f32 %v3596_v61, %v3553_v22 }
 0x150   : > { %vm1394_vm7 = vweird.f32 %v3553_v22  ;;  %vm1395_vm8 = vweird.f32 %v3596_v61  ;;  %v1398_v2 = vand.u32 2147483647, %v3553_v22  ;;  %v1400_v6 = vand.u32 2147483648, %v3553_v22  ;;  %vm1381_vm9 = vmor %vm1379_vm4, %vm1380_vm6 }
 0x151   : > { %v1457_v15 = vsel %vm1456_vm5, %v3676_v60, %v1453_v11  ;;  %v2569_v58 = vpop.eup %2568  ;;  %v1378_v57 = vadd.f32 %v3500_v55, %v1377_v41  ;;  %v1391_v12 = vsub.f32 1.0, %v1390_v25  ;;  %v1664_v60 = vld [vmem:[%s3943_s30 + $0x28] sm:$0xff]  ;;  %vm1384_vm10 = vcmp.eq.f32.partialorder %v1383_v20, 8.507059e+37  ;;  %vm4000_vm12 = vmor %vm1394_vm7, %vm1395_vm8 }
 0x152   : > { %v1462_v19 = vsel %vm3948_vm3, %v1461_v35, %v1457_v15  ;;  %v2571_v32 = vpop.eup %2570  ;;  %v3985_v1 = vadd.f32 1.0, %v2569_v58  ;;  %v1386_v9 = vor.u32 1.1754944e-38, %v1385_v29  ;;  %v2041_v33 = vmul.f32 %v3833_v14, %v1663_v53  ;;  %v1665_v53 = vld [vmem:[%s3943_s30 + $0x30] sm:$0xff]  ;;  %v4035_v15 = vpop.permute.xlu2 %1809 }
 0x153   : > { %1969 = vperm.xlu0 %2360, %v1462_v19   ;;  %v3992_v7 = vadd.f32 1.0, %v2571_v32  ;;  %v1382_v39 = vsel %vm1381_vm9, %v3500_v55, %v1378_v57  ;;  %v1392_v13 = vmul.f32 %v3596_v61, %v1391_v12  ;;  %vm2146_vm11 = vcmask 556032   ;;  %v1666_v12 = vld [vmem:[%s3943_s30 + $0x38] sm:$0xff] }
 0x154   : > { %v2573_v37 = vpop.eup %2572  ;;  %v1387_v23 = vsel %vm1384_vm10, %v1386_v9, %v1382_v39  ;;  %v1401_v38 = vor.u32 1.1754944e-38, %v1400_v6  ;;  %v2042_v3 = vmul.f32 %v3833_v14, %v1664_v60  ;;  %2150 = vst [vmem:[%s3982_s7 + $0x20] sm:$0xff] %v2041_v33  ;;  %v1495_v55 = vmul.f32 %v3767_v21, %v3732_v46 }
 0x155   : > { %2574 = vrcp.f32 %v3985_v1  ;;  %v4011_v34 = vadd.f32 1.0, %v2573_v37  ;;  %1944 = vperm.xlu2 %2362, %v1387_v23   ;;  %v1393_v22 = vadd.f32 %v3596_v61, %v1392_v13  ;;  %vm1399_vm13 = vcmp.eq.f32.partialorder %v1398_v2, 8.507059e+37  ;;  %v4037_v2 = vpop.permute.xlu1 %1789 }
 0x156   : > { %2576 = vrcp.f32 %v3992_v7  ;;  %2151 = vst.msk [vmem:[%s3982_s7 + $0x28] sm:$0xff] %vm2146_vm11, %v2042_v3  ;;  %v1496_v16 = vsub.f32 1.0, %v1495_v55  ;;  %v1503_v14 = vand.u32 2147483647, %v3732_v46  ;;  %v1505_v62 = vand.u32 2147483648, %v3732_v46  ;;  %v1659_v3 = vld [vmem:[%s3943_s30] sm:$0xff] }
 0x157   : > { %v1397_v56 = vsel %vm4000_vm12, %v3596_v61, %v1393_v22  ;;  %vm1499_vm14 = vweird.f32 %v3732_v46  ;;  %vm1500_vm15 = vweird.f32 %v3767_v21  ;;  %v1420_v11 = vmul.f32 %v3582_v50, %v3532_v43 }
 0x158   : > { %2578 = vrcp.f32 %v4011_v34  ;;  %v1402_v20 = vsel %vm1399_vm13, %v1401_v38, %v1397_v56  ;;  %v1497_v29 = vmul.f32 %v3767_v21, %v1496_v16  ;;  %vm1424_vm0 = vweird.f32 %v3532_v43  ;;  %vm1501_vm3 = vmor %vm1499_vm14, %vm1500_vm15 }
 0x159   : > { %1949 = vperm.xlu1 %2361, %v1402_v20   ;;  %vm4029_vm1 = vcmp.eq.f32.partialorder %v1503_v14, 8.507059e+37  ;;  %v1506_v61 = vor.u32 1.1754944e-38, %v1505_v62  ;;  %v1421_v41 = vsub.f32 1.0, %v1420_v11  ;;  %v1428_v25 = vand.u32 2147483647, %v3532_v43  ;;  %v1660_v14 = vld [vmem:[%s3943_s30 + $0x8] sm:$0xff]  ;;  %v4084_v62 = vpop.permute.xlu0 %1819 }
 0x15a   : > { %v1498_v58 = vadd.f32 %v3767_v21, %v1497_v29  ;;  %vm1425_vm2 = vweird.f32 %v3582_v50  ;;  %v1430_v19 = vand.u32 2147483648, %v3532_v43  ;;  %v1435_v57 = vmul.f32 %v3690_v0, %v3655_v4  ;;  %v1667_v43 = vld [vmem:[%s3943_s30 + $0x40] sm:$0xff] }
 0x15b   : > { %v4045_v6 = vpop.eup %2574  ;;  %v1422_v60 = vmul.f32 %v3582_v50, %v1421_v41  ;;  %vm1439_vm4 = vweird.f32 %v3655_v4  ;;  %vm1440_vm5 = vweird.f32 %v3690_v0  ;;  %v1443_v32 = vand.u32 2147483647, %v3655_v4  ;;  %vm1426_vm7 = vmor %vm1424_vm0, %vm1425_vm2 }
 0x15c   : > { %v4055_v9 = vpop.eup %2576  ;;  %v1502_v33 = vsel %vm1501_vm3, %v3767_v21, %v1498_v58  ;;  %v1436_v39 = vsub.f32 1.0, %v1435_v57  ;;  %v1445_v13 = vand.u32 2147483648, %v3655_v4  ;;  %v2043_v46 = vmul.f32 %v3903_v49, %v1665_v53  ;;  %vm4091_vm9 = vmor %vm1439_vm4, %vm1440_vm5 }
 0x15d   : > { %v1507_v37 = vsel %vm4029_vm1, %v1506_v61, %v1502_v33  ;;  %v1423_v23 = vadd.f32 %v3582_v50, %v1422_v60  ;;  %vm4063_vm6 = vcmp.eq.f32.partialorder %v1428_v25, 8.507059e+37  ;;  %v2044_v38 = vmul.f32 %v3903_v49, %v1666_v12  ;;  %v1669_v60 = vld [vmem:[%s3943_s30 + $0x50] sm:$0xff]  ;;  %v4126_v33 = vpop.permute.xlu1 %1799 }
 0x15e   : > { %v4069_v21 = vpop.eup %2578  ;;  %1984 = vperm.xlu0 %2360, %v1507_v37   ;;  %v1431_v55 = vor.u32 1.1754944e-38, %v1430_v19  ;;  %v1437_v22 = vmul.f32 %v3690_v0, %v1436_v39  ;;  %vm4076_vm8 = vcmp.eq.f32.partialorder %v1443_v32, 8.507059e+37  ;;  %2152 = vst [vmem:[%s3982_s7 + $0x30] sm:$0xff] %v2043_v46  ;;  %v1540_v49 = vmul.f32 %v3857_v5, %v3804_v59  ;;  %v4124_v32 = vpop.permute.xlu2 %1824  ;;  %v1670_v37 = vld [vmem:[%s3943_s30 + $0x58] sm:$0xff] }
 0x15f   : > { %v1427_v56 = vsel %vm1426_vm7, %v3582_v50, %v1423_v23  ;;  %v1446_v11 = vor.u32 1.1754944e-38, %v1445_v13  ;;  %2153 = vst.msk [vmem:[%s3982_s7 + $0x38] sm:$0xff] %vm2146_vm11, %v2044_v38  ;;  %v1548_v20 = vand.u32 2147483647, %v3804_v59  ;;  %v1550_v29 = vand.u32 2147483648, %v3804_v59  ;;  %v1661_v38 = vld [vmem:[%s3943_s30 + $0x10] sm:$0xff] }
 0x160   : > { %v1432_v50 = vsel %vm4063_vm6, %v1431_v55, %v1427_v56  ;;  %v1438_v35 = vadd.f32 %v3690_v0, %v1437_v22  ;;  %v1541_v61 = vsub.f32 1.0, %v1540_v49  ;;  %v2037_v4 = vmul.f32 %v3930_v8, %v1659_v3  ;;  %v1662_v3 = vld [vmem:[%s3943_s30 + $0x18] sm:$0xff] }
 0x161   : > { %1959 = vperm.xlu2 %2362, %v1432_v50   ;;  %vm1544_vm10 = vweird.f32 %v3804_v59  ;;  %vm1545_vm12 = vweird.f32 %v3857_v5  ;;  %v2038_v41 = vmul.f32 %v3930_v8, %v1660_v14  ;;  %v1465_v25 = vmul.f32 %v3670_v47, %v3615_v63  ;;  %v4147_v49 = vpop.permute.xlu0 %1834 }
 0x162   : > { %v1442_v53 = vsel %vm4091_vm9, %v3690_v0, %v1438_v35  ;;  %v1542_v58 = vmul.f32 %v3857_v5, %v1541_v61  ;;  %vm4112_vm13 = vcmp.eq.f32.partialorder %v1548_v20, 8.507059e+37  ;;  %v1551_v57 = vor.u32 1.1754944e-38, %v1550_v29  ;;  %2145 = vst [vmem:[%s3982_s7] sm:$0xff] %v2037_v4  ;;  %vm1546_vm0 = vmor %vm1544_vm10, %vm1545_vm12  ;;  %v1673_v35 = vld [vmem:[%s3943_s30 + $0x70] sm:$0xff]  ;;  %v1674_v61 = vld [vmem:[%s3943_s30 + $0x78] sm:$0xff] }
 0x163   : > { %v1447_v12 = vsel %vm4076_vm8, %v1446_v11, %v1442_v53  ;;  %2147 = vst.msk [vmem:[%s3982_s7 + $0x8] sm:$0xff] %vm2146_vm11, %v2038_v41  ;;  %v1466_v8 = vsub.f32 1.0, %v1465_v25  ;;  %vm1469_vm14 = vweird.f32 %v3615_v63  ;;  %v1473_v0 = vand.u32 2147483647, %v3615_v63  ;;  %v1680_v4 = vld [vmem:[%s3943_s30 + $0xa8] sm:$0xff] }
 0x164   : > { %1964 = vperm.xlu1 %2361, %v1447_v12   ;;  %v1543_v39 = vadd.f32 %v3857_v5, %v1542_v58  ;;  %vm1470_vm15 = vweird.f32 %v3670_v47  ;;  %v1475_v13 = vand.u32 2147483648, %v3615_v63  ;;  %v1480_v46 = vmul.f32 %v3772_v10, %v3739_v27  ;;  %v1679_v63 = vld [vmem:[%s3943_s30 + $0xa0] sm:$0xff] }
 0x165   : > { %v1467_v23 = vmul.f32 %v3670_v47, %v1466_v8  ;;  %vm1484_vm1 = vweird.f32 %v3739_v27  ;;  %vm1485_vm2 = vweird.f32 %v3772_v10  ;;  %v1488_v24 = vand.u32 2147483647, %v3739_v27  ;;  %vm1471_vm4 = vmor %vm1469_vm14, %vm1470_vm15 }
 0x166   : > { %v1547_v55 = vsel %vm1546_vm0, %v3857_v5, %v1543_v39  ;;  %v1481_v22 = vsub.f32 1.0, %v1480_v46  ;;  %v1490_v16 = vand.u32 2147483648, %v3739_v27  ;;  %v2047_v59 = vmul.f32 %v3965_v54, %v1669_v60  ;;  %vm4172_vm5 = vmor %vm1484_vm1, %vm1485_vm2  ;;  %v4196_v8 = vpop.permute.xlu2 %1839 }
 0x167   : > { %v1552_v14 = vsel %vm4112_vm13, %v1551_v57, %v1547_v55  ;;  %v1468_v56 = vadd.f32 %v3670_v47, %v1467_v23  ;;  %vm4152_vm3 = vcmp.eq.f32.partialorder %v1473_v0, 8.507059e+37  ;;  %v2048_v5 = vmul.f32 %v3965_v54, %v1670_v37  ;;  %v4198_v0 = vpop.permute.xlu1 %1814 }
 0x168   : > { %1999 = vperm.xlu0 %2360, %v1552_v14   ;;  %v1476_v11 = vor.u32 1.1754944e-38, %v1475_v13  ;;  %v1482_v20 = vmul.f32 %v3772_v10, %v1481_v22  ;;  %2156 = vst [vmem:[%s3982_s7 + $0x50] sm:$0xff] %v2047_v59  ;;  %v2039_v29 = vmul.f32 %v3967_v45, %v1661_v38  ;;  %v2040_v50 = vmul.f32 %v3967_v45, %v1662_v3  ;;  %v1675_v38 = vld [vmem:[%s3943_s30 + $0x80] sm:$0xff] }
 0x169   : > { %v1472_v54 = vsel %vm1471_vm4, %v3670_v47, %v1468_v56  ;;  %vm4176_vm6 = vcmp.eq.f32.partialorder %v1488_v24, 8.507059e+37  ;;  %v1491_v41 = vor.u32 1.1754944e-38, %v1490_v16  ;;  %2157 = vst.msk [vmem:[%s3982_s7 + $0x58] sm:$0xff] %vm2146_vm11, %v2048_v5  ;;  %v1585_v45 = vmul.f32 %v3953_v42, %v3890_v18  ;;  %v4221_v3 = vpop.permute.xlu0 %1849  ;;  %v1676_v16 = vld [vmem:[%s3943_s30 + $0x88] sm:$0xff] }
 0x16a   : > { %v1477_v47 = vsel %vm4152_vm3, %v1476_v11, %v1472_v54  ;;  %v1483_v25 = vadd.f32 %v3772_v10, %v1482_v20  ;;  %2148 = vst [vmem:[%s3982_s7 + $0x10] sm:$0xff] %v2039_v29  ;;  %v1593_v27 = vand.u32 2147483647, %v3890_v18  ;;  %v1595_v53 = vand.u32 2147483648, %v3890_v18  ;;  %v1668_v5 = vld [vmem:[%s3943_s30 + $0x48] sm:$0xff]  ;;  %v1685_v29 = vld [vmem:[%s3943_s30 + $0xd0] sm:$0xff] }
 0x16b   : > { %1974 = vperm.xlu2 %2362, %v1477_v47   ;;  %2149 = vst.msk [vmem:[%s3982_s7 + $0x18] sm:$0xff] %vm2146_vm11, %v2040_v50  ;;  %v1586_v58 = vsub.f32 1.0, %v1585_v45  ;;  %v2051_v19 = vmul.f32 %v4008_v52, %v1673_v35  ;;  %v2052_v57 = vmul.f32 %v4008_v52, %v1674_v61  ;;  %v1510_v12 = vmul.f32 %v3754_v40, %v3716_v44 }
 0x16c   : > { %v1487_v60 = vsel %vm4172_vm5, %v3772_v10, %v1483_v25  ;;  %vm1589_vm7 = vweird.f32 %v3890_v18  ;;  %vm1590_vm8 = vweird.f32 %v3953_v42  ;;  %vm4205_vm9 = vcmp.eq.f32.partialorder %v1593_v27, 8.507059e+37 }
 0x16d   : > { %v1492_v52 = vsel %vm4176_vm6, %v1491_v41, %v1487_v60  ;;  %v1587_v13 = vmul.f32 %v3953_v42, %v1586_v58  ;;  %v1596_v46 = vor.u32 1.1754944e-38, %v1595_v53  ;;  %2160 = vst [vmem:[%s3982_s7 + $0x70] sm:$0xff] %v2051_v19  ;;  %v1511_v37 = vsub.f32 1.0, %v1510_v12  ;;  %vm1591_vm14 = vmor %vm1589_vm7, %vm1590_vm8 }
 0x16e   : > { %1979 = vperm.xlu1 %2361, %v1492_v52   ;;  %2161 = vst.msk [vmem:[%s3982_s7 + $0x78] sm:$0xff] %vm2146_vm11, %v2052_v57  ;;  %vm1514_vm10 = vweird.f32 %v3716_v44  ;;  %v1518_v10 = vand.u32 2147483647, %v3716_v44  ;;  %v1520_v23 = vand.u32 2147483648, %v3716_v44  ;;  %v1525_v24 = vmul.f32 %v3863_v36, %v3815_v31  ;;  %v4272_v25 = vpop.permute.xlu2 %1854  ;;  %v1699_v44 = vld [vmem:[%s3943_s30 + $0x140] sm:$0xff] }
 0x16f   : > { %v1588_v55 = vadd.f32 %v3953_v42, %v1587_v13  ;;  %v1512_v22 = vmul.f32 %v3754_v40, %v1511_v37  ;;  %vm1515_vm12 = vweird.f32 %v3754_v40  ;;  %vm1529_vm13 = vweird.f32 %v3815_v31  ;;  %v4274_v27 = vpop.permute.xlu1 %1829 }
 0x170   : > { %v1526_v59 = vsub.f32 1.0, %v1525_v24  ;;  %vm1530_vm15 = vweird.f32 %v3863_v36  ;;  %v1533_v14 = vand.u32 2147483647, %v3815_v31  ;;  %v1535_v56 = vand.u32 2147483648, %v3815_v31  ;;  %vm4250_vm1 = vmor %vm1514_vm10, %vm1515_vm12 }
 0x171   : > { %v1592_v11 = vsel %vm1591_vm14, %v3953_v42, %v1588_v55  ;;  %v1513_v20 = vadd.f32 %v3754_v40, %v1512_v22  ;;  %vm4239_vm0 = vcmp.eq.f32.partialorder %v1518_v10, 8.507059e+37  ;;  %v2053_v18 = vmul.f32 %v4035_v15, %v1675_v38  ;;  %vm4265_vm2 = vmor %vm1529_vm13, %vm1530_vm15  ;;  %v1682_v55 = vld [vmem:[%s3943_s30 + $0xb8] sm:$0xff]  ;;  %v1671_v22 = vld [vmem:[%s3943_s30 + $0x60] sm:$0xff] }
 0x172   : > { %v1597_v50 = vsel %vm4205_vm9, %v1596_v46, %v1592_v11  ;;  %v1521_v42 = vor.u32 1.1754944e-38, %v1520_v23  ;;  %v1527_v61 = vmul.f32 %v3863_v36, %v1526_v59  ;;  %v2054_v54 = vmul.f32 %v4035_v15, %v1676_v16  ;;  %v1681_v23 = vld [vmem:[%s3943_s30 + $0xb0] sm:$0xff] }
 0x173   : > { %2014 = vperm.xlu0 %2360, %v1597_v50   ;;  %v1517_v41 = vsel %vm4250_vm1, %v3754_v40, %v1513_v20  ;;  %v1536_v45 = vor.u32 1.1754944e-38, %v1535_v56  ;;  %2162 = vst [vmem:[%s3982_s7 + $0x80] sm:$0xff] %v2053_v18  ;;  %v2045_v15 = vmul.f32 %v4037_v2, %v1667_v43  ;;  %v2046_v47 = vmul.f32 %v4037_v2, %v1668_v5  ;;  %v1672_v56 = vld [vmem:[%s3943_s30 + $0x68] sm:$0xff]  ;;  %v1686_v18 = vld [vmem:[%s3943_s30 + $0xd8] sm:$0xff] }
 0x174   : > { %v1522_v40 = vsel %vm4239_vm0, %v1521_v42, %v1517_v41  ;;  %v1528_v31 = vadd.f32 %v3863_v36, %v1527_v61  ;;  %vm1534_vm3 = vcmp.eq.f32.partialorder %v1533_v14, 8.507059e+37  ;;  %2163 = vst.msk [vmem:[%s3982_s7 + $0x88] sm:$0xff] %vm2146_vm11, %v2054_v54  ;;  %v1630_v53 = vmul.f32 %v4055_v9, %v3992_v7 }
 0x175   : > { %1989 = vperm.xlu2 %2362, %v1522_v40   ;;  %2154 = vst [vmem:[%s3982_s7 + $0x40] sm:$0xff] %v2045_v15  ;;  %v1638_v2 = vand.u32 2147483647, %v3992_v7  ;;  %v1640_v58 = vand.u32 2147483648, %v3992_v7  ;;  %v2057_v19 = vmul.f32 %v4084_v62, %v1679_v63  ;;  %v2058_v57 = vmul.f32 %v4084_v62, %v1680_v4  ;;  %v1687_v40 = vld [vmem:[%s3943_s30 + $0xe0] sm:$0xff] }
 0x176   : > { %v1532_v12 = vsel %vm4265_vm2, %v3863_v36, %v1528_v31  ;;  %2155 = vst.msk [vmem:[%s3982_s7 + $0x48] sm:$0xff] %vm2146_vm11, %v2046_v47  ;;  %v1631_v60 = vsub.f32 1.0, %v1630_v53  ;;  %vm1634_vm4 = vweird.f32 %v3992_v7  ;;  %v1555_v39 = vmul.f32 %v3849_v28, %v3800_v17  ;;  %v4303_v36 = vpop.permute.xlu0 %1864  ;;  %v4334_v50 = vpop.permute.xlu2 %1869  ;;  %v1688_v31 = vld [vmem:[%s3943_s30 + $0xe8] sm:$0xff]  ;;  %v1677_v53 = vld [vmem:[%s3943_s30 + $0x90] sm:$0xff] }
 0x177   : > { %v1537_v52 = vsel %vm1534_vm3, %v1536_v45, %v1532_v12  ;;  %vm1635_vm5 = vweird.f32 %v4055_v9  ;;  %vm4297_vm6 = vcmp.eq.f32.partialorder %v1638_v2, 8.507059e+37  ;;  %2166 = vst [vmem:[%s3982_s7 + $0xa0] sm:$0xff] %v2057_v19  ;;  %vm1559_vm7 = vweird.f32 %v3800_v17  ;;  %v4340_v54 = vpop.permute.xlu1 %1844  ;;  %v1678_v12 = vld [vmem:[%s3943_s30 + $0x98] sm:$0xff] }
 0x178   : > { %1994 = vperm.xlu1 %2361, %v1537_v52   ;;  %v1632_v62 = vmul.f32 %v4055_v9, %v1631_v60  ;;  %v1641_v46 = vor.u32 1.1754944e-38, %v1640_v58  ;;  %2167 = vst.msk [vmem:[%s3982_s7 + $0xa8] sm:$0xff] %vm2146_vm11, %v2058_v57  ;;  %v1556_v37 = vsub.f32 1.0, %v1555_v39  ;;  %v1563_v10 = vand.u32 2147483647, %v3800_v17  ;;  %vm1636_vm12 = vmor %vm1634_vm4, %vm1635_vm5 }
 0x179   : > { %vm1560_vm8 = vweird.f32 %v3849_v28  ;;  %v1565_v24 = vand.u32 2147483648, %v3800_v17  ;;  %v1570_v38 = vmul.f32 %v3958_v48, %v3905_v30  ;;  %vm1574_vm9 = vweird.f32 %v3905_v30 }
 0x17a   : > { %v1633_v16 = vadd.f32 %v4055_v9, %v1632_v62  ;;  %v1557_v59 = vmul.f32 %v3849_v28, %v1556_v37  ;;  %vm1575_vm10 = vweird.f32 %v3958_v48  ;;  %v1578_v14 = vand.u32 2147483647, %v3905_v30  ;;  %vm1561_vm14 = vmor %vm1559_vm7, %vm1560_vm8 }
 0x17b   : > { %vm4326_vm13 = vcmp.eq.f32.partialorder %v1563_v10, 8.507059e+37  ;;  %v1571_v5 = vsub.f32 1.0, %v1570_v38  ;;  %v1580_v11 = vand.u32 2147483648, %v3905_v30  ;;  %v2059_v20 = vmul.f32 %v4124_v32, %v1681_v23  ;;  %vm4356_vm15 = vmor %vm1574_vm9, %vm1575_vm10  ;;  %v1692_v10 = vld [vmem:[%s3943_s30 + $0x108] sm:$0xff] }
 0x17c   : > { %v1637_v35 = vsel %vm1636_vm12, %v4055_v9, %v1633_v16  ;;  %v1558_v7 = vadd.f32 %v3849_v28, %v1557_v59  ;;  %v2060_v42 = vmul.f32 %v4124_v32, %v1682_v55  ;;  %v2049_v61 = vmul.f32 %v4126_v33, %v1671_v22  ;;  %v1693_v22 = vld [vmem:[%s3943_s30 + $0x110] sm:$0xff] }
 0x17d   : > { %v1642_v63 = vsel %vm4297_vm6, %v1641_v46, %v1637_v35  ;;  %v1566_v4 = vor.u32 1.1754944e-38, %v1565_v24  ;;  %v1572_v9 = vmul.f32 %v3958_v48, %v1571_v5  ;;  %2168 = vst [vmem:[%s3982_s7 + $0xb0] sm:$0xff] %v2059_v20  ;;  %v2050_v32 = vmul.f32 %v4126_v33, %v1672_v56  ;;  %v1683_v20 = vld [vmem:[%s3943_s30 + $0xc0] sm:$0xff]  ;;  %v1702_v56 = vld [vmem:[%s3943_s30 + $0x158] sm:$0xff] }
 0x17e   : > { %2029 = vperm.xlu0 %2360, %v1642_v63   ;;  %v1562_v41 = vsel %vm1561_vm14, %v3849_v28, %v1558_v7  ;;  %v1581_v17 = vor.u32 1.1754944e-38, %v1580_v11  ;;  %2169 = vst.msk [vmem:[%s3982_s7 + $0xb8] sm:$0xff] %vm2146_vm11, %v2060_v42  ;;  %v2063_v45 = vmul.f32 %v4147_v49, %v1685_v29  ;;  %v2064_v33 = vmul.f32 %v4147_v49, %v1686_v18  ;;  %v4390_v60 = vpop.permute.xlu0 %1879  ;;  %v4409_v16 = vpop.permute.xlu2 %1884  ;;  %v1697_v63 = vld [vmem:[%s3943_s30 + $0x130] sm:$0xff] }
 0x17f   : > { %v1567_v28 = vsel %vm4326_vm13, %v1566_v4, %v1562_v41  ;;  %v1573_v30 = vadd.f32 %v3958_v48, %v1572_v9  ;;  %vm4367_vm0 = vcmp.eq.f32.partialorder %v1578_v14, 8.507059e+37  ;;  %2158 = vst [vmem:[%s3982_s7 + $0x60] sm:$0xff] %v2049_v61  ;;  %v1600_v47 = vmul.f32 %v3945_v51, %v3885_v26  ;;  %v4434_v29 = vpop.permute.xlu1 %1859  ;;  %v1698_v9 = vld [vmem:[%s3943_s30 + $0x138] sm:$0xff] }
 0x180   : > { %2004 = vperm.xlu2 %2362, %v1567_v28   ;;  %2159 = vst.msk [vmem:[%s3982_s7 + $0x68] sm:$0xff] %vm2146_vm11, %v2050_v32  ;;  %vm1604_vm1 = vweird.f32 %v3885_v26  ;;  %vm1605_vm2 = vweird.f32 %v3945_v51  ;;  %v1615_v49 = vmul.f32 %v4069_v21, %v4011_v34  ;;  %v1608_v19 = vand.u32 2147483647, %v3885_v26 }
 0x181   : > { %v1577_v2 = vsel %vm4356_vm15, %v3958_v48, %v1573_v30  ;;  %2172 = vst [vmem:[%s3982_s7 + $0xd0] sm:$0xff] %v2063_v45  ;;  %v1601_v58 = vsub.f32 1.0, %v1600_v47  ;;  %v1610_v57 = vand.u32 2147483648, %v3885_v26  ;;  %vm1619_vm3 = vweird.f32 %v4011_v34  ;;  %v1691_v48 = vld [vmem:[%s3943_s30 + $0x100] sm:$0xff]  ;;  %vm1606_vm6 = vmor %vm1604_vm1, %vm1605_vm2 }
 0x182   : > { %v1582_v39 = vsel %vm4367_vm0, %v1581_v17, %v1577_v2  ;;  %2173 = vst.msk [vmem:[%s3982_s7 + $0xd8] sm:$0xff] %vm2146_vm11, %v2064_v33  ;;  %v1616_v52 = vsub.f32 1.0, %v1615_v49  ;;  %vm1620_vm4 = vweird.f32 %v4069_v21  ;;  %v1623_v62 = vand.u32 2147483647, %v4011_v34  ;;  %v1700_v33 = vld [vmem:[%s3943_s30 + $0x148] sm:$0xff]  ;;  %v1690_v49 = vld [vmem:[%s3943_s30 + $0xf8] sm:$0xff] }
 0x183   : > { %2009 = vperm.xlu1 %2361, %v1582_v39   ;;  %v1602_v13 = vmul.f32 %v3945_v51, %v1601_v58  ;;  %v1625_v46 = vand.u32 2147483648, %v4011_v34  ;;  %v2065_v37 = vmul.f32 %v4196_v8, %v1687_v40  ;;  %v2066_v24 = vmul.f32 %v4196_v8, %v1688_v31  ;;  %vm4416_vm5 = vmor %vm1619_vm3, %vm1620_vm4  ;;  %v1704_v58 = vld [vmem:[%s3943_s30 + $0x168] sm:$0xff]  ;;  %v1706_v39 = vld [vmem:[%s3943_s30 + $0x178] sm:$0xff] }
 0x184   : > { %v1617_v23 = vmul.f32 %v4069_v21, %v1616_v52  ;;  %v2055_v38 = vmul.f32 %v4198_v0, %v1677_v53  ;;  %v2056_v55 = vmul.f32 %v4198_v0, %v1678_v12  ;;  %v1611_v14 = vor.u32 1.1754944e-38, %v1610_v57  ;;  %v1694_v0 = vld [vmem:[%s3943_s30 + $0x118] sm:$0xff]  ;;  %v1703_v53 = vld [vmem:[%s3943_s30 + $0x160] sm:$0xff] }
 0x185   : > { %v1603_v59 = vadd.f32 %v3945_v51, %v1602_v13  ;;  %2174 = vst [vmem:[%s3982_s7 + $0xe0] sm:$0xff] %v2065_v37  ;;  %v2069_v8 = vmul.f32 %v4221_v3, %v1691_v48  ;;  %v1626_v5 = vor.u32 1.1754944e-38, %v1625_v46  ;;  %v2070_v34 = vmul.f32 %v4221_v3, %v1692_v10  ;;  %v1684_v3 = vld [vmem:[%s3943_s30 + $0xc8] sm:$0xff]  ;;  %v1695_v48 = vld [vmem:[%s3943_s30 + $0x120] sm:$0xff]  ;;  %v1709_v46 = vld [vmem:[%s3943_s30 + $0x190] sm:$0xff] }
 0x186   : > { %v1618_v43 = vadd.f32 %v4069_v21, %v1617_v23  ;;  %2175 = vst.msk [vmem:[%s3982_s7 + $0xe8] sm:$0xff] %vm2146_vm11, %v2066_v24  ;;  %v1645_v11 = vmul.f32 %v4045_v6, %v3985_v1  ;;  %vm1609_vm7 = vcmp.eq.f32.partialorder %v1608_v19, 8.507059e+37  ;;  %vm4437_vm8 = vcmp.eq.f32.partialorder %v1623_v62, 8.507059e+37  ;;  %v1895_v28 = vpop.permute.xlu0 %1894  ;;  %v1696_v13 = vld [vmem:[%s3943_s30 + $0x128] sm:$0xff]  ;;  %v1711_v24 = vld [vmem:[%s3943_s30 + $0x1a0] sm:$0xff] }
 0x187   : > { %v1607_v18 = vsel %vm1606_vm6, %v3945_v51, %v1603_v59  ;;  %2164 = vst [vmem:[%s3982_s7 + $0x90] sm:$0xff] %v2055_v38  ;;  %v2071_v35 = vmul.f32 %v4272_v25, %v1693_v22  ;;  %v2072_v61 = vmul.f32 %v4272_v25, %v1694_v0  ;;  %vm1649_vm9 = vweird.f32 %v3985_v1  ;;  %v1715_v0 = vld [vmem:[%s3943_s30 + $0x1c0] sm:$0xff] }
 0x188   : > { %v1612_v7 = vsel %vm1609_vm7, %v1611_v14, %v1607_v18  ;;  %v1622_v42 = vsel %vm4416_vm5, %v4069_v21, %v1618_v43  ;;  %2165 = vst.msk [vmem:[%s3982_s7 + $0x98] sm:$0xff] %vm2146_vm11, %v2056_v55  ;;  %v1646_v51 = vsub.f32 1.0, %v1645_v11  ;;  %vm1650_vm10 = vweird.f32 %v4045_v6  ;;  %v1900_v2 = vpop.permute.xlu2 %1899  ;;  %v1875_v57 = vpop.permute.xlu1 %1874  ;;  %v1712_v55 = vld [vmem:[%s3943_s30 + $0x1a8] sm:$0xff]  ;;  %v1718_v18 = vld [vmem:[%s3943_s30 + $0x1d8] sm:$0xff] }
 0x189   : > { %2019 = vperm.xlu2 %2362, %v1612_v7   ;;  %2178 = vst [vmem:[%s3982_s7 + $0x100] sm:$0xff] %v2069_v8  ;;  %v2061_v4 = vmul.f32 %v4274_v27, %v1683_v20  ;;  %v1627_v21 = vsel %vm4437_vm8, %v1626_v5, %v1622_v42  ;;  %v1655_v32 = vand.u32 2147483648, %v3985_v1  ;;  %v2062_v41 = vmul.f32 %v4274_v27, %v1684_v3  ;;  %v1689_v27 = vld [vmem:[%s3943_s30 + $0xf0] sm:$0xff]  ;;  %vm1651_vm12 = vmor %vm1649_vm9, %vm1650_vm10  ;;  %v1708_v7 = vld [vmem:[%s3943_s30 + $0x188] sm:$0xff] }
 0x18a   : > { %2179 = vst.msk [vmem:[%s3982_s7 + $0x108] sm:$0xff] %vm2146_vm11, %v2070_v34  ;;  %v1647_v25 = vmul.f32 %v4045_v6, %v1646_v51  ;;  %v1653_v17 = vand.u32 2147483647, %v3985_v1  ;;  %v2075_v45 = vmul.f32 %v4303_v36, %v1697_v63  ;;  %v2076_v15 = vmul.f32 %v4303_v36, %v1698_v9  ;;  %v1716_v34 = vld [vmem:[%s3943_s30 + $0x1c8] sm:$0xff]  ;;  %v1717_v20 = vld [vmem:[%s3943_s30 + $0x1d0] sm:$0xff] }
 0x18b   : > { %2024 = vperm.xlu1 %2361, %v1627_v21   ;;  %2180 = vst [vmem:[%s3982_s7 + $0x110] sm:$0xff] %v2071_v35  ;;  %v2077_v47 = vmul.f32 %v4334_v50, %v1699_v44  ;;  %v1656_v31 = vor.u32 1.1754944e-38, %v1655_v32  ;;  %v2078_v36 = vmul.f32 %v4334_v50, %v1700_v33  ;;  %v2067_v1 = vmul.f32 %v4340_v54, %v1689_v27  ;;  %v1705_v50 = vld [vmem:[%s3943_s30 + $0x170] sm:$0xff]  ;;  %v1707_v35 = vld [vmem:[%s3943_s30 + $0x180] sm:$0xff] }
 0x18c   : > { %v1648_v30 = vadd.f32 %v4045_v6, %v1647_v25  ;;  %2181 = vst.msk [vmem:[%s3982_s7 + $0x118] sm:$0xff] %vm2146_vm11, %v2072_v61  ;;  %vm1654_vm13 = vcmp.eq.f32.partialorder %v1653_v17, 8.507059e+37  ;;  %v2068_v19 = vmul.f32 %v4340_v54, %v1690_v49  ;;  %v2081_v12 = vmul.f32 %v4390_v60, %v1703_v53  ;;  %v1721_v61 = vld [vmem:[%s3943_s30 + $0x1f0] sm:$0xff]  ;;  %v1723_v21 = vld [vmem:[%s3943_s30 + $0x200] sm:$0xff] }
 0x18d   : > { %2170 = vst [vmem:[%s3982_s7 + $0xc0] sm:$0xff] %v2061_v4  ;;  %v2082_v52 = vmul.f32 %v4390_v60, %v1704_v58  ;;  %v2083_v54 = vmul.f32 %v4409_v16, %v1705_v50  ;;  %v2084_v62 = vmul.f32 %v4409_v16, %v1706_v39  ;;  %v2073_v37 = vmul.f32 %v4434_v29, %v1695_v48  ;;  %v1710_v60 = vld [vmem:[%s3943_s30 + $0x198] sm:$0xff]  ;;  %v1701_v16 = vld [vmem:[%s3943_s30 + $0x150] sm:$0xff]  ;;  %v1727_v27 = vld [vmem:[%s3943_s30 + $0x220] sm:$0xff] }
 0x18e   : > { %v1652_v40 = vsel %vm1651_vm12, %v4045_v6, %v1648_v30  ;;  %2171 = vst.msk [vmem:[%s3982_s7 + $0xc8] sm:$0xff] %vm2146_vm11, %v2062_v41  ;;  %v2074_v23 = vmul.f32 %v4434_v29, %v1696_v13  ;;  %v2087_v38 = vmul.f32 %v1895_v28, %v1709_v46  ;;  %v2088_v22 = vmul.f32 %v1895_v28, %v1710_v60  ;;  %v1722_v4 = vld [vmem:[%s3943_s30 + $0x1f8] sm:$0xff]  ;;  %v1724_v41 = vld [vmem:[%s3943_s30 + $0x208] sm:$0xff]  ;;  %v1713_v17 = vld [vmem:[%s3943_s30 + $0x1b0] sm:$0xff] }
 0x18f   : > { %2184 = vst [vmem:[%s3982_s7 + $0x130] sm:$0xff] %v2075_v45  ;;  %v1657_v6 = vsel %vm1654_vm13, %v1656_v31, %v1652_v40  ;;  %v1910_v10 = vpop.permute.xlu0 %1909  ;;  %v2089_v14 = vmul.f32 %v1900_v2, %v1711_v24  ;;  %v2090_v8 = vmul.f32 %v1900_v2, %v1712_v55  ;;  %v2079_v5 = vmul.f32 %v1875_v57, %v1701_v16  ;;  %v1714_v28 = vld [vmem:[%s3943_s30 + $0x1b8] sm:$0xff]  ;;  %v1729_v53 = vld [vmem:[%s3943_s30 + $0x230] sm:$0xff]  ;;  %v1720_v58 = vld [vmem:[%s3943_s30 + $0x1e8] sm:$0xff] }
 0x190   : > { %2185 = vst.msk [vmem:[%s3982_s7 + $0x138] sm:$0xff] %vm2146_vm11, %v2076_v15  ;;  %v2080_v11 = vmul.f32 %v1875_v57, %v1702_v56  ;;  %v2093_v29 = vmul.f32 %v1910_v10, %v1715_v0  ;;  %v2094_v26 = vmul.f32 %v1910_v10, %v1716_v34  ;;  %v1730_v2 = vld [vmem:[%s3943_s30 + $0x238] sm:$0xff]  ;;  %v1735_v46 = vld [vmem:[%s3943_s30 + $0x260] sm:$0xff]  ;;  %v1725_v10 = vld [vmem:[%s3943_s30 + $0x210] sm:$0xff] }
 0x191   : > { %2034 = vperm.xlu2 %2362, %v1657_v6   ;;  %2186 = vst [vmem:[%s3982_s7 + $0x140] sm:$0xff] %v2077_v47  ;;  %v1728_v47 = vld [vmem:[%s3943_s30 + $0x228] sm:$0xff]  ;;  %v1734_v48 = vld [vmem:[%s3943_s30 + $0x258] sm:$0xff]  ;;  %v1741_v56 = vld [vmem:[%s3943_s30 + $0x290] sm:$0xff] }
 0x192   : > { %2187 = vst.msk [vmem:[%s3982_s7 + $0x148] sm:$0xff] %vm2146_vm11, %v2078_v36 }
 0x193   : > { %2176 = vst [vmem:[%s3982_s7 + $0xf0] sm:$0xff] %v2067_v1  ;;  %v1719_v1 = vld [vmem:[%s3943_s30 + $0x1e0] sm:$0xff] }
 0x194   : > { %2177 = vst.msk [vmem:[%s3982_s7 + $0xf8] sm:$0xff] %vm2146_vm11, %v2068_v19 }
 0x195   : > { %2190 = vst [vmem:[%s3982_s7 + $0x160] sm:$0xff] %v2081_v12  ;;  %v1915_v59 = vpop.permute.xlu2 %1914  ;;  %v1890_v43 = vpop.permute.xlu1 %1889 }
 0x196   : > { %2191 = vst.msk [vmem:[%s3982_s7 + $0x168] sm:$0xff] %vm2146_vm11, %v2082_v52  ;;  %v2095_v3 = vmul.f32 %v1915_v59, %v1717_v20  ;;  %v2096_v51 = vmul.f32 %v1915_v59, %v1718_v18  ;;  %v2085_v63 = vmul.f32 %v1890_v43, %v1707_v35  ;;  %v2086_v9 = vmul.f32 %v1890_v43, %v1708_v7  ;;  %v1733_v52 = vld [vmem:[%s3943_s30 + $0x250] sm:$0xff]  ;;  %v1739_v59 = vld [vmem:[%s3943_s30 + $0x280] sm:$0xff]  ;;  %v1732_v18 = vld [vmem:[%s3943_s30 + $0x248] sm:$0xff] }
 0x197   : > { %2192 = vst [vmem:[%s3982_s7 + $0x170] sm:$0xff] %v2083_v54  ;;  %v1747_v7 = vld [vmem:[%s3943_s30 + $0x2c0] sm:$0xff] }
 0x198   : > { %2193 = vst.msk [vmem:[%s3982_s7 + $0x178] sm:$0xff] %vm2146_vm11, %v2084_v62 }
 0x199   : > { %2182 = vst [vmem:[%s3982_s7 + $0x120] sm:$0xff] %v2073_v37  ;;  %v1736_v37 = vld [vmem:[%s3943_s30 + $0x268] sm:$0xff] }
 0x19a   : > { %2183 = vst.msk [vmem:[%s3982_s7 + $0x128] sm:$0xff] %vm2146_vm11, %v2074_v23  ;;  %v1726_v23 = vld [vmem:[%s3943_s30 + $0x218] sm:$0xff] }
 0x19b   : > { %2196 = vst [vmem:[%s3982_s7 + $0x190] sm:$0xff] %v2087_v38 }
 0x19c   : > { %2197 = vst.msk [vmem:[%s3982_s7 + $0x198] sm:$0xff] %vm2146_vm11, %v2088_v22 }
 0x19d   : > { %2198 = vst [vmem:[%s3982_s7 + $0x1a0] sm:$0xff] %v2089_v14  ;;  %v1925_v42 = vpop.permute.xlu0 %1924  ;;  %v1740_v14 = vld [vmem:[%s3943_s30 + $0x288] sm:$0xff] }
 0x19e   : > { %2199 = vst.msk [vmem:[%s3982_s7 + $0x1a8] sm:$0xff] %vm2146_vm11, %v2090_v8  ;;  %v2099_v32 = vmul.f32 %v1925_v42, %v1721_v61  ;;  %v2100_v44 = vmul.f32 %v1925_v42, %v1722_v4  ;;  %v1742_v8 = vld [vmem:[%s3943_s30 + $0x298] sm:$0xff]  ;;  %v1745_v42 = vld [vmem:[%s3943_s30 + $0x2b0] sm:$0xff]  ;;  %v1748_v61 = vld [vmem:[%s3943_s30 + $0x2c8] sm:$0xff] }
 0x19f   : > { %2188 = vst [vmem:[%s3982_s7 + $0x150] sm:$0xff] %v2079_v5 }
 0x1a0   : > { %2189 = vst.msk [vmem:[%s3982_s7 + $0x158] sm:$0xff] %vm2146_vm11, %v2080_v11 }
 0x1a1   : > { %2202 = vst [vmem:[%s3982_s7 + $0x1c0] sm:$0xff] %v2093_v29  ;;  %v1731_v29 = vld [vmem:[%s3943_s30 + $0x240] sm:$0xff] }
 0x1a2   : > { %2203 = vst.msk [vmem:[%s3982_s7 + $0x1c8] sm:$0xff] %vm2146_vm11, %v2094_v26  ;;  %v1930_v25 = vpop.permute.xlu2 %1929  ;;  %v1905_v45 = vpop.permute.xlu1 %1904 }
 0x1a3   : > { %2204 = vst [vmem:[%s3982_s7 + $0x1d0] sm:$0xff] %v2095_v3  ;;  %v2101_v33 = vmul.f32 %v1930_v25, %v1723_v21  ;;  %v2102_v30 = vmul.f32 %v1930_v25, %v1724_v41  ;;  %v2091_v15 = vmul.f32 %v1905_v45, %v1713_v17  ;;  %v2092_v49 = vmul.f32 %v1905_v45, %v1714_v28  ;;  %v1737_v41 = vld [vmem:[%s3943_s30 + $0x270] sm:$0xff]  ;;  %v1751_v28 = vld [vmem:[%s3943_s30 + $0x2e0] sm:$0xff] }
 0x1a4   : > { %2205 = vst.msk [vmem:[%s3982_s7 + $0x1d8] sm:$0xff] %vm2146_vm11, %v2096_v51  ;;  %v1746_v51 = vld [vmem:[%s3943_s30 + $0x2b8] sm:$0xff] }
 0x1a5   : > { %2194 = vst [vmem:[%s3982_s7 + $0x180] sm:$0xff] %v2085_v63 }
 0x1a6   : > { %2195 = vst.msk [vmem:[%s3982_s7 + $0x188] sm:$0xff] %vm2146_vm11, %v2086_v9 }
 0x1a7   : > { %2208 = vst [vmem:[%s3982_s7 + $0x1f0] sm:$0xff] %v2099_v32 }
 0x1a8   : > { %2209 = vst.msk [vmem:[%s3982_s7 + $0x1f8] sm:$0xff] %vm2146_vm11, %v2100_v44  ;;  %v1738_v44 = vld [vmem:[%s3943_s30 + $0x278] sm:$0xff] }
 0x1a9   : > { %2210 = vst [vmem:[%s3982_s7 + $0x200] sm:$0xff] %v2101_v33 }
 0x1aa   : > { %v1940_v40 = vpop.permute.xlu0 %1939  ;;  %2211 = vst.msk [vmem:[%s3982_s7 + $0x208] sm:$0xff] %vm2146_vm11, %v2102_v30  ;;  %v1752_v30 = vld [vmem:[%s3943_s30 + $0x2e8] sm:$0xff] }
 0x1ab   : > { %v2105_v31 = vmul.f32 %v1940_v40, %v1727_v27  ;;  %v2106_v36 = vmul.f32 %v1940_v40, %v1728_v47  ;;  %2200 = vst [vmem:[%s3982_s7 + $0x1b0] sm:$0xff] %v2091_v15  ;;  %v1753_v15 = vld [vmem:[%s3943_s30 + $0x2f0] sm:$0xff]  ;;  %v1754_v27 = vld [vmem:[%s3943_s30 + $0x2f8] sm:$0xff] }
 0x1ac   : > { %2201 = vst.msk [vmem:[%s3982_s7 + $0x1b8] sm:$0xff] %vm2146_vm11, %v2092_v49 }
 0x1ad   : > { %2214 = vst [vmem:[%s3982_s7 + $0x220] sm:$0xff] %v2105_v31 }
 0x1ae   : > { %2215 = vst.msk [vmem:[%s3982_s7 + $0x228] sm:$0xff] %vm2146_vm11, %v2106_v36 }
 0x1af   : > { %v1945_v6 = vpop.permute.xlu2 %1944 }
 0x1b0   : > { %v2107_v19 = vmul.f32 %v1945_v6, %v1729_v53  ;;  %v2108_v50 = vmul.f32 %v1945_v6, %v1730_v2  ;;  %v1920_v57 = vpop.permute.xlu1 %1919  ;;  %v1743_v2 = vld [vmem:[%s3943_s30 + $0x2a0] sm:$0xff] }
 0x1b1   : > { %v2097_v12 = vmul.f32 %v1920_v57, %v1719_v1  ;;  %v2098_v39 = vmul.f32 %v1920_v57, %v1720_v58  ;;  %v1744_v1 = vld [vmem:[%s3943_s30 + $0x2a8] sm:$0xff] }
 0x1b2   : > { %2216 = vst [vmem:[%s3982_s7 + $0x230] sm:$0xff] %v2107_v19  ;;  %v1760_v57 = vld [vmem:[%s3943_s30 + $0x328] sm:$0xff] }
 0x1b3   : > { %2217 = vst.msk [vmem:[%s3982_s7 + $0x238] sm:$0xff] %vm2146_vm11, %v2108_v50  ;;  %v1759_v50 = vld [vmem:[%s3943_s30 + $0x320] sm:$0xff] }
 0x1b4   : > { %2206 = vst [vmem:[%s3982_s7 + $0x1e0] sm:$0xff] %v2097_v12  ;;  %v1757_v12 = vld [vmem:[%s3943_s30 + $0x310] sm:$0xff] }
 0x1b5   : > { %2207 = vst.msk [vmem:[%s3982_s7 + $0x1e8] sm:$0xff] %vm2146_vm11, %v2098_v39  ;;  %v1758_v39 = vld [vmem:[%s3943_s30 + $0x318] sm:$0xff] }
 0x1b7   : > { %v1955_v54 = vpop.permute.xlu0 %1954 }
 0x1b8   : > { %v2111_v13 = vmul.f32 %v1955_v54, %v1733_v52  ;;  %v2112_v62 = vmul.f32 %v1955_v54, %v1734_v48 }
 0x1ba   : > { %2220 = vst [vmem:[%s3982_s7 + $0x250] sm:$0xff] %v2111_v13 }
 0x1bb   : > { %2221 = vst.msk [vmem:[%s3982_s7 + $0x258] sm:$0xff] %vm2146_vm11, %v2112_v62  ;;  %v1960_v60 = vpop.permute.xlu2 %1959 }
 0x1bc   : > { %v2113_v24 = vmul.f32 %v1960_v60, %v1735_v46  ;;  %v2114_v38 = vmul.f32 %v1960_v60, %v1736_v37  ;;  %v1749_v37 = vld [vmem:[%s3943_s30 + $0x2d0] sm:$0xff]  ;;  %v1750_v60 = vld [vmem:[%s3943_s30 + $0x2d8] sm:$0xff] }
 0x1be   : > { %v1935_v55 = vpop.permute.xlu1 %1934  ;;  %2222 = vst [vmem:[%s3982_s7 + $0x260] sm:$0xff] %v2113_v24 }
 0x1bf   : > { %v2103_v22 = vmul.f32 %v1935_v55, %v1725_v10  ;;  %v2104_v16 = vmul.f32 %v1935_v55, %v1726_v23  ;;  %2223 = vst.msk [vmem:[%s3982_s7 + $0x268] sm:$0xff] %vm2146_vm11, %v2114_v38  ;;  %v1765_v10 = vld [vmem:[%s3943_s30 + $0x350] sm:$0xff]  ;;  %v1766_v23 = vld [vmem:[%s3943_s30 + $0x358] sm:$0xff] }
 0x1c1   : > { %2212 = vst [vmem:[%s3982_s7 + $0x210] sm:$0xff] %v2103_v22 }
 0x1c2   : > { %2213 = vst.msk [vmem:[%s3982_s7 + $0x218] sm:$0xff] %vm2146_vm11, %v2104_v16 }
 0x1c5   : > { %v1970_v0 = vpop.permute.xlu0 %1969  ;;  %v1975_v34 = vpop.permute.xlu2 %1974 }
 0x1c6   : > { %v2117_v43 = vmul.f32 %v1970_v0, %v1739_v59  ;;  %v2118_v5 = vmul.f32 %v1970_v0, %v1740_v14  ;;  %v2119_v11 = vmul.f32 %v1975_v34, %v1741_v56  ;;  %v2120_v20 = vmul.f32 %v1975_v34, %v1742_v8  ;;  %v1763_v14 = vld [vmem:[%s3943_s30 + $0x340] sm:$0xff]  ;;  %v1764_v56 = vld [vmem:[%s3943_s30 + $0x348] sm:$0xff] }
 0x1c7   : > { %v1756_v34 = vld [vmem:[%s3943_s30 + $0x308] sm:$0xff] }
 0x1c8   : > { %2226 = vst [vmem:[%s3982_s7 + $0x280] sm:$0xff] %v2117_v43 }
 0x1c9   : > { %2227 = vst.msk [vmem:[%s3982_s7 + $0x288] sm:$0xff] %vm2146_vm11, %v2118_v5  ;;  %v1755_v5 = vld [vmem:[%s3943_s30 + $0x300] sm:$0xff] }
 0x1ca   : > { %2228 = vst [vmem:[%s3982_s7 + $0x290] sm:$0xff] %v2119_v11 }
 0x1cb   : > { %2229 = vst.msk [vmem:[%s3982_s7 + $0x298] sm:$0xff] %vm2146_vm11, %v2120_v20  ;;  %v1950_v26 = vpop.permute.xlu1 %1949 }
 0x1cc   : > { %v2109_v35 = vmul.f32 %v1950_v26, %v1731_v29  ;;  %v2110_v3 = vmul.f32 %v1950_v26, %v1732_v18  ;;  %v1761_v18 = vld [vmem:[%s3943_s30 + $0x330] sm:$0xff]  ;;  %v1762_v26 = vld [vmem:[%s3943_s30 + $0x338] sm:$0xff] }
 0x1ce   : > { %2218 = vst [vmem:[%s3982_s7 + $0x240] sm:$0xff] %v2109_v35 }
 0x1cf   : > { %2219 = vst.msk [vmem:[%s3982_s7 + $0x248] sm:$0xff] %vm2146_vm11, %v2110_v3  ;;  %v1990_v63 = vpop.permute.xlu2 %1989 }
 0x1d0   : > { %v1985_v4 = vpop.permute.xlu0 %1984  ;;  %v2125_v9 = vmul.f32 %v1990_v63, %v1747_v7  ;;  %v2126_v32 = vmul.f32 %v1990_v63, %v1748_v61 }
 0x1d1   : > { %v2123_v21 = vmul.f32 %v1985_v4, %v1745_v42  ;;  %v2124_v25 = vmul.f32 %v1985_v4, %v1746_v51 }
 0x1d2   : > { %2234 = vst [vmem:[%s3982_s7 + $0x2c0] sm:$0xff] %v2125_v9 }
 0x1d3   : > { %2232 = vst [vmem:[%s3982_s7 + $0x2b0] sm:$0xff] %v2123_v21 }
 0x1d4   : > { %2233 = vst.msk [vmem:[%s3982_s7 + $0x2b8] sm:$0xff] %vm2146_vm11, %v2124_v25 }
 0x1d5   : > { %2235 = vst.msk [vmem:[%s3982_s7 + $0x2c8] sm:$0xff] %vm2146_vm11, %v2126_v32 }
 0x1d6   : > { %v1965_v17 = vpop.permute.xlu1 %1964 }
 0x1d7   : > { %v2115_v45 = vmul.f32 %v1965_v17, %v1737_v41  ;;  %v2116_v33 = vmul.f32 %v1965_v17, %v1738_v44 }
 0x1d9   : > { %2224 = vst [vmem:[%s3982_s7 + $0x270] sm:$0xff] %v2115_v45 }
 0x1da   : > { %2225 = vst.msk [vmem:[%s3982_s7 + $0x278] sm:$0xff] %vm2146_vm11, %v2116_v33  ;;  %v2000_v47 = vpop.permute.xlu0 %1999  ;;  %v2005_v49 = vpop.permute.xlu2 %2004 }
 0x1db   : > { %v2129_v40 = vmul.f32 %v2000_v47, %v1751_v28  ;;  %v2130_v31 = vmul.f32 %v2000_v47, %v1752_v30  ;;  %v2131_v36 = vmul.f32 %v2005_v49, %v1753_v15  ;;  %v2132_v53 = vmul.f32 %v2005_v49, %v1754_v27 }
 0x1dd   : > { %2238 = vst [vmem:[%s3982_s7 + $0x2e0] sm:$0xff] %v2129_v40 }
 0x1de   : > { %2239 = vst.msk [vmem:[%s3982_s7 + $0x2e8] sm:$0xff] %vm2146_vm11, %v2130_v31 }
 0x1df   : > { %2240 = vst [vmem:[%s3982_s7 + $0x2f0] sm:$0xff] %v2131_v36 }
 0x1e0   : > { %2241 = vst.msk [vmem:[%s3982_s7 + $0x2f8] sm:$0xff] %vm2146_vm11, %v2132_v53  ;;  %v1980_v58 = vpop.permute.xlu1 %1979 }
 0x1e1   : > { %v2121_v6 = vmul.f32 %v1980_v58, %v1743_v2  ;;  %v2122_v19 = vmul.f32 %v1980_v58, %v1744_v1 }
 0x1e3   : > { %2230 = vst [vmem:[%s3982_s7 + $0x2a0] sm:$0xff] %v2121_v6  ;;  %v2020_v52 = vpop.permute.xlu2 %2019 }
 0x1e4   : > { %2231 = vst.msk [vmem:[%s3982_s7 + $0x2a8] sm:$0xff] %vm2146_vm11, %v2122_v19  ;;  %v2137_v48 = vmul.f32 %v2020_v52, %v1759_v50  ;;  %v2138_v54 = vmul.f32 %v2020_v52, %v1760_v57 }
 0x1e5   : > { %v2015_v13 = vpop.permute.xlu0 %2014 }
 0x1e6   : > { %v2135_v62 = vmul.f32 %v2015_v13, %v1757_v12  ;;  %v2136_v46 = vmul.f32 %v2015_v13, %v1758_v39  ;;  %2246 = vst [vmem:[%s3982_s7 + $0x320] sm:$0xff] %v2137_v48 }
 0x1e7   : > { %2247 = vst.msk [vmem:[%s3982_s7 + $0x328] sm:$0xff] %vm2146_vm11, %v2138_v54 }
 0x1e8   : > { %2244 = vst [vmem:[%s3982_s7 + $0x310] sm:$0xff] %v2135_v62 }
 0x1e9   : > { %2245 = vst.msk [vmem:[%s3982_s7 + $0x318] sm:$0xff] %vm2146_vm11, %v2136_v46 }
 0x1ea   : > { %v1995_v24 = vpop.permute.xlu1 %1994 }
 0x1eb   : > { %v2127_v38 = vmul.f32 %v1995_v24, %v1749_v37  ;;  %v2128_v55 = vmul.f32 %v1995_v24, %v1750_v60  ;;  %v2035_v22 = vpop.permute.xlu2 %2034 }
 0x1ec   : > { %v2143_v16 = vmul.f32 %v2035_v22, %v1765_v10  ;;  %v2144_v59 = vmul.f32 %v2035_v22, %v1766_v23 }
 0x1ed   : > { %2236 = vst [vmem:[%s3982_s7 + $0x2d0] sm:$0xff] %v2127_v38 }
 0x1ee   : > { %2237 = vst.msk [vmem:[%s3982_s7 + $0x2d8] sm:$0xff] %vm2146_vm11, %v2128_v55 }
 0x1ef   : > { %2252 = vst [vmem:[%s3982_s7 + $0x350] sm:$0xff] %v2143_v16 }
 0x1f0   : > { %v2030_v8 = vpop.permute.xlu0 %2029  ;;  %2253 = vst.msk [vmem:[%s3982_s7 + $0x358] sm:$0xff] %vm2146_vm11, %v2144_v59 }
 0x1f1   : > { %v2141_v0 = vmul.f32 %v2030_v8, %v1763_v14  ;;  %v2142_v43 = vmul.f32 %v2030_v8, %v1764_v56 }
 0x1f3   : > { %2250 = vst [vmem:[%s3982_s7 + $0x340] sm:$0xff] %v2141_v0 }
 0x1f4   : > { %2251 = vst.msk [vmem:[%s3982_s7 + $0x348] sm:$0xff] %vm2146_vm11, %v2142_v43 }
 0x1f5   : > { %v2010_v11 = vpop.permute.xlu1 %2009 }
 0x1f6   : > { %v2133_v20 = vmul.f32 %v2010_v11, %v1755_v5  ;;  %v2134_v29 = vmul.f32 %v2010_v11, %v1756_v34 }
 0x1f8   : > { %2242 = vst [vmem:[%s3982_s7 + $0x300] sm:$0xff] %v2133_v20 }
 0x1f9   : > { %2243 = vst.msk [vmem:[%s3982_s7 + $0x308] sm:$0xff] %vm2146_vm11, %v2134_v29 }
 0x1fd   : > { %v2025_v35 = vpop.permute.xlu1 %2024 }
 0x1fe   : > { %v2139_v3 = vmul.f32 %v2025_v35, %v1761_v18  ;;  %v2140_v7 = vmul.f32 %v2025_v35, %v1762_v26 }
 0x200   : > { %2248 = vst [vmem:[%s3982_s7 + $0x330] sm:$0xff] %v2139_v3 }
 0x201   : > { %2249 = vst.msk [vmem:[%s3982_s7 + $0x338] sm:$0xff] %vm2146_vm11, %v2140_v7 }
 0x202 PF: > { %s14_s15 = sadd.s32 1, %s2586_s15  }
 0x203   : > { %p11_p4 = scmp.ge.s32.totalorder %s14_s15, 4  }
 0x205   :  { %13 = sbr.rel (!%p11_p4) target bundleno = 1 (0x1), region = 72 }

</bundles_post_ra>
